<compile_context>
chip_gen: v7x
topology: tpu7x:2x2x1
jax: 0.10.0
libtpu: 0.0.40
codegen_flags: <defaults>
</compile_context>

<pallas_src>
import functools

import jax
import jax.numpy as jnp
from jax.experimental import pallas as pl
from jax.experimental.pallas import tpu as pltpu


# Lane offsets inside the packed shift vector (all multiples of 128 -> aligned).
_OFF_SH1 = 0      # 256 wide : fc1 bias folded with BN1
_OFF_SH2 = 256    # 128 wide : fc2 bias folded with BN2
_OFF_BA1 = 384    # 128 wide : attention fc1 bias
_OFF_BA2 = 512    # 128 wide : attention fc2 bias
_OFF_SH3 = 640    # 128 wide : classifier fc bias folded with BN3
_OFF_BC2 = 768    # 128 wide : final linear bias (zero-padded)
_SHIFT_WIDTH = 896


# ----------------------------------------------------------------------------
# Kernel: whole MLP forward for one batch tile (5 MXU matmuls + elementwise).
# ----------------------------------------------------------------------------
def mlp_classifier_kernel(x_ref, w1_ref, w2_ref, wsq_ref, sh_ref, out_ref):
    leaky = lambda v: jnp.where(v >= 0, v, 0.2 * v)            # LeakyReLU(0.2)

    def sigmoid(v):
        # exp (EUP) + approximate reciprocal (EUP) -> no VALU divide.
        return pl.reciprocal(1.0 + jnp.exp(-v), approx=True)

    sh1 = sh_ref[:, _OFF_SH1:_OFF_SH1 + 256]
    sh2 = sh_ref[:, _OFF_SH2:_OFF_SH2 + 128]
    ba1 = sh_ref[:, _OFF_BA1:_OFF_BA1 + 128]
    ba2 = sh_ref[:, _OFF_BA2:_OFF_BA2 + 128]
    sh3 = sh_ref[:, _OFF_SH3:_OFF_SH3 + 128]
    bc2 = sh_ref[:, _OFF_BC2:_OFF_BC2 + 128]

    x = x_ref[...]                                             # bf16 [TB, 128]

    # ---- feature_net (BN folded; Dropout = identity in eval) ----
    h = jnp.dot(x, w1_ref[...], preferred_element_type=jnp.float32) + sh1
    h = leaky(h)
    h = jnp.dot(h.astype(jnp.bfloat16), w2_ref[...],
                preferred_element_type=jnp.float32) + sh2
    feats = leaky(h)                                           # f32 [TB, 128]
    feats_bf = feats.astype(jnp.bfloat16)

    # ---- attention ----
    a = jnp.dot(feats_bf, wsq_ref[0], preferred_element_type=jnp.float32) + ba1
    a = jnp.maximum(a, 0.0)                                    # ReLU
    a = jnp.dot(a.astype(jnp.bfloat16), wsq_ref[1],
                preferred_element_type=jnp.float32) + ba2
    a = sigmoid(sigmoid(a))   # Sigmoid in Sequential + extra torch.sigmoid(...)

    weighted = (feats * a).astype(jnp.bfloat16)

    # ---- classifier (BN folded; final layer lane-padded to 128) ----
    c = jnp.dot(weighted, wsq_ref[2], preferred_element_type=jnp.float32) + sh3
    c = leaky(c)
    logits = jnp.dot(c.astype(jnp.bfloat16), wsq_ref[3],
                     preferred_element_type=jnp.float32) + bc2
    out_ref[...] = logits.astype(out_ref.dtype)


# ----------------------------------------------------------------------------
# Parameter construction (deterministic, synthetic) — PyTorch layout transposed
# to [in, out] so the kernel computes x @ W.
# ----------------------------------------------------------------------------
def make_params(key, input_dim, num_classes):
    ks = jax.random.split(key, 16)

    def lin(kw, kb, fan_in, fan_out):
        w = 0.05 * jax.random.normal(kw, (fan_in, fan_out), jnp.float32)
        b = 0.05 * jax.random.normal(kb, (1, fan_out), jnp.float32)
        return w, b

    def bn(kg, kb, km, kv, n, eps=1e-5):
        gamma = 1.0 + 0.1 * jax.random.normal(kg, (1, n), jnp.float32)
        beta = 0.1 * jax.random.normal(kb, (1, n), jnp.float32)
        rmean = 0.1 * jax.random.normal(km, (1, n), jnp.float32)
        rvar = 0.5 + jnp.abs(jax.random.normal(kv, (1, n), jnp.float32))
        scale = gamma / jnp.sqrt(rvar + eps)
        shift = beta - rmean * scale
        return scale, shift

    w1, b1 = lin(ks[0], ks[1], input_dim, 256)
    s1, sh1 = bn(ks[2], ks[3], ks[4], ks[5], 256)
    w2, b2 = lin(ks[6], ks[7], 256, 128)
    s2, sh2 = bn(ks[8], ks[9], ks[10], ks[11], 128)
    wa1, ba1 = lin(ks[12], ks[13], 128, 128)
    wa2, ba2 = lin(ks[14], ks[15], 128, 128)

    ks2 = jax.random.split(jax.random.fold_in(key, 123), 8)
    wc1, bc1 = lin(ks2[0], ks2[1], 128, 128)
    s3, sh3 = bn(ks2[2], ks2[3], ks2[4], ks2[5], 128)
    wc2, bc2 = lin(ks2[6], ks2[7], 128, num_classes)

    return (w1, b1, s1, sh1, w2, b2, s2, sh2,
            wa1, ba1, wa2, ba2,
            wc1, bc1, s3, sh3, wc2, bc2)


# ----------------------------------------------------------------------------
# BN folding + operand packing (wrapper-side glue).
# ----------------------------------------------------------------------------
def fold_params(params):
    (w1, b1, s1, sh1, w2, b2, s2, sh2,
     wa1, ba1, wa2, ba2, wc1, bc1, s3, sh3, wc2, bc2) = params
    w1f = w1 * s1
    shift1 = b1 * s1 + sh1
    w2f = w2 * s2
    shift2 = b2 * s2 + sh2
    wc1f = wc1 * s3
    shift3 = bc1 * s3 + sh3
    return (w1f, shift1, w2f, shift2, wa1, ba1, wa2, ba2, wc1f, shift3, wc2, bc2)


def pack_params(folded, input_dim, num_classes, k_pad):
    (w1f, shift1, w2f, shift2, wa1, ba1, wa2, ba2,
     wc1f, shift3, wc2, bc2) = folded
    w1p = jnp.zeros((k_pad, 256), jnp.float32).at[:input_dim, :].set(w1f)
    wc2p = jnp.zeros((128, 128), jnp.float32).at[:, :num_classes].set(wc2)
    bc2p = jnp.zeros((1, 128), jnp.float32).at[:, :num_classes].set(bc2)
    wsq = jnp.stack([wa1, wa2, wc1f, wc2p])                    # [4, 128, 128]
    shifts = jnp.concatenate([shift1, shift2, ba1, ba2, shift3, bc2p], axis=1)
    return (w1p.astype(jnp.bfloat16), w2f.astype(jnp.bfloat16),
            wsq.astype(jnp.bfloat16), shifts.astype(jnp.float32))


# ----------------------------------------------------------------------------
# Forward wrapper: batch grid with resident weights, lane-padded in/out.
# ----------------------------------------------------------------------------
def mlp_classifier_forward(x, params, *, block_b=128, k_pad=128):
    batch, input_dim = x.shape
    num_classes = params[-2].shape[1]
    w1p, w2p, wsq, shifts = pack_params(fold_params(params),
                                        input_dim, num_classes, k_pad)

    b_pad = pl.cdiv(batch, block_b) * block_b
    x_p = jnp.zeros((b_pad, k_pad), jnp.bfloat16).at[:batch, :input_dim].set(
        x.astype(jnp.bfloat16))

    const2 = lambda i: (0, 0)
    flops = 2 * b_pad * (k_pad * 256 + 256 * 128 + 3 * 128 * 128)
    bytes_accessed = (x_p.size * 2 + b_pad * 128 * 4
                      + w1p.size * 2 + w2p.size * 2 + wsq.size * 2
                      + shifts.size * 4)

    out = pl.pallas_call(
        mlp_classifier_kernel,
        out_shape=jax.ShapeDtypeStruct((b_pad, 128), jnp.float32),
        grid=(b_pad // block_b,),
        in_specs=[
            pl.BlockSpec((block_b, k_pad), lambda i: (i, 0)),          # x tile
            pl.BlockSpec((k_pad, 256), const2),                        # w1 (folded)
            pl.BlockSpec((256, 128), const2),                          # w2 (folded)
            pl.BlockSpec((4, 128, 128), lambda i: (0, 0, 0)),          # square weights
            pl.BlockSpec((1, _SHIFT_WIDTH), const2),                   # packed shifts
        ],
        out_specs=pl.BlockSpec((block_b, 128), lambda i: (i, 0)),
        compiler_params=pltpu.CompilerParams(
            dimension_semantics=("parallel",)),
        cost_estimate=pl.CostEstimate(
            flops=flops,
            transcendentals=4 * b_pad * 128,
            bytes_accessed=bytes_accessed),
    )(x_p, w1p, w2p, wsq, shifts)
    return out[:batch, :num_classes]


# ----------------------------------------------------------------------------
# Pure-JAX reference (same folded params / bf16 matmul operands, exact sigmoid).
# ----------------------------------------------------------------------------
def reference_forward(x, params):
    (w1f, shift1, w2f, shift2, wa1, ba1, wa2, ba2,
     wc1f, shift3, wc2, bc2) = fold_params(params)
    leaky = lambda v: jnp.where(v >= 0, v, 0.2 * v)
    bf = lambda v: v.astype(jnp.bfloat16)
    dot = lambda a, b: jnp.dot(bf(a), bf(b), preferred_element_type=jnp.float32)

    h = leaky(dot(x, w1f) + shift1)
    feats = leaky(dot(h, w2f) + shift2)
    a = jnp.maximum(dot(feats, wa1) + ba1, 0.0)
    a = jax.nn.sigmoid(jax.nn.sigmoid(dot(a, wa2) + ba2))
    c = leaky(dot(feats * a, wc1f) + shift3)
    return dot(c, wc2) + bc2


if __name__ == "__main__":
    key = jax.random.PRNGKey(0)
    batch, input_dim, num_classes = 256, 64, 1

    kx, kp = jax.random.split(key)
    x = jax.random.normal(kx, (batch, input_dim), jnp.float32)
    params = make_params(kp, input_dim, num_classes)

    fwd = jax.jit(functools.partial(mlp_classifier_forward, block_b=128))
    out = jax.block_until_ready(fwd(x, params))

    ref = reference_forward(x, params)
    assert out.shape == (batch, num_classes), out.shape
    assert jnp.allclose(out, ref, atol=1e-2, rtol=1e-2), (
        float(jnp.max(jnp.abs(out - ref))))
    print("KERNEL_OK")
</pallas_src>

<mosaic_0001>
module attributes {stable_mosaic.version = 11 : i64} {
  func.func @mlp_classifier_kernel(%arg0: i32, %arg1: memref<128x128xbf16, #tpu.memory_space<vmem>>, %arg2: memref<128x256xbf16, #tpu.memory_space<vmem>>, %arg3: memref<256x128xbf16, #tpu.memory_space<vmem>>, %arg4: memref<4x128x128xbf16, #tpu.memory_space<vmem>>, %arg5: memref<1x896xf32, #tpu.memory_space<vmem>>, %arg6: memref<128x128xf32, #tpu.memory_space<vmem>>) attributes {dimension_semantics = [#tpu.dimension_semantics<parallel>], iteration_bounds = array<i64: 2>, scalar_prefetch = 0 : i64, scratch_operands = 0 : i64, tpu.core_type = #tpu.core_type<tc>, window_params = [{transform_indices = @transform_0, window_bounds = array<i64: 128, 128>}, {pipeline_mode = #tpu.pipeline_mode<synchronous>, transform_indices = @transform_1, window_bounds = array<i64: 128, 256>}, {pipeline_mode = #tpu.pipeline_mode<synchronous>, transform_indices = @transform_2, window_bounds = array<i64: 256, 128>}, {pipeline_mode = #tpu.pipeline_mode<synchronous>, transform_indices = @transform_3, window_bounds = array<i64: 4, 128, 128>}, {pipeline_mode = #tpu.pipeline_mode<synchronous>, transform_indices = @transform_4, window_bounds = array<i64: 1, 896>}, {transform_indices = @transform_5, window_bounds = array<i64: 128, 128>}]} {
    %c0 = arith.constant 0 : index
    %c0_0 = arith.constant 0 : index
    %0 = vector.load %arg5[%c0, %c0_0] : memref<1x896xf32, #tpu.memory_space<vmem>>, vector<1x256xf32>
    %c0_1 = arith.constant 0 : index
    %c256 = arith.constant 256 : index
    %1 = vector.load %arg5[%c0_1, %c256] : memref<1x896xf32, #tpu.memory_space<vmem>>, vector<1x128xf32>
    %c0_2 = arith.constant 0 : index
    %c384 = arith.constant 384 : index
    %2 = vector.load %arg5[%c0_2, %c384] : memref<1x896xf32, #tpu.memory_space<vmem>>, vector<1x128xf32>
    %c0_3 = arith.constant 0 : index
    %c512 = arith.constant 512 : index
    %3 = vector.load %arg5[%c0_3, %c512] : memref<1x896xf32, #tpu.memory_space<vmem>>, vector<1x128xf32>
    %c0_4 = arith.constant 0 : index
    %c640 = arith.constant 640 : index
    %4 = vector.load %arg5[%c0_4, %c640] : memref<1x896xf32, #tpu.memory_space<vmem>>, vector<1x128xf32>
    %c0_5 = arith.constant 0 : index
    %c768 = arith.constant 768 : index
    %5 = vector.load %arg5[%c0_5, %c768] : memref<1x896xf32, #tpu.memory_space<vmem>>, vector<1x128xf32>
    %c0_6 = arith.constant 0 : index
    %c0_7 = arith.constant 0 : index
    %6 = vector.load %arg1[%c0_6, %c0_7] : memref<128x128xbf16, #tpu.memory_space<vmem>>, vector<128x128xbf16>
    %c0_8 = arith.constant 0 : index
    %c0_9 = arith.constant 0 : index
    %7 = vector.load %arg2[%c0_8, %c0_9] : memref<128x256xbf16, #tpu.memory_space<vmem>>, vector<128x256xbf16>
    %cst = arith.constant dense<0.000000e+00> : vector<128x256xf32>
    %8 = tpu.matmul %6, %7, %cst {dimension_numbers = #tpu.dot_dimension_numbers<[1], [0], [0], [1], [0, 0, 1, 1], [], []>} : vector<128x128xbf16>, vector<128x256xbf16>, vector<128x256xf32> -> vector<128x256xf32>
    %9 = vector.broadcast %0 : vector<1x256xf32> to vector<128x256xf32>
    %10 = arith.addf %8, %9 : vector<128x256xf32>
    %cst_10 = arith.constant 0.000000e+00 : f32
    %11 = vector.broadcast %cst_10 : f32 to vector<128x256xf32>
    %12 = arith.cmpf oge, %10, %11 : vector<128x256xf32>
    %cst_11 = arith.constant 2.000000e-01 : f32
    %13 = vector.broadcast %cst_11 : f32 to vector<128x256xf32>
    %14 = arith.mulf %13, %10 : vector<128x256xf32>
    %15 = arith.select %12, %10, %14 : vector<128x256xi1>, vector<128x256xf32>
    %16 = arith.truncf %15 : vector<128x256xf32> to vector<128x256xbf16>
    %c0_12 = arith.constant 0 : index
    %c0_13 = arith.constant 0 : index
    %17 = vector.load %arg3[%c0_12, %c0_13] : memref<256x128xbf16, #tpu.memory_space<vmem>>, vector<256x128xbf16>
    %cst_14 = arith.constant dense<0.000000e+00> : vector<128x128xf32>
    %18 = tpu.matmul %16, %17, %cst_14 {dimension_numbers = #tpu.dot_dimension_numbers<[1], [0], [0], [1], [0, 0, 1, 1], [], []>} : vector<128x256xbf16>, vector<256x128xbf16>, vector<128x128xf32> -> vector<128x128xf32>
    %19 = vector.broadcast %1 : vector<1x128xf32> to vector<128x128xf32>
    %20 = arith.addf %18, %19 : vector<128x128xf32>
    %cst_15 = arith.constant 0.000000e+00 : f32
    %21 = vector.broadcast %cst_15 : f32 to vector<128x128xf32>
    %22 = arith.cmpf oge, %20, %21 : vector<128x128xf32>
    %cst_16 = arith.constant 2.000000e-01 : f32
    %23 = vector.broadcast %cst_16 : f32 to vector<128x128xf32>
    %24 = arith.mulf %23, %20 : vector<128x128xf32>
    %25 = arith.select %22, %20, %24 : vector<128x128xi1>, vector<128x128xf32>
    %26 = arith.truncf %25 : vector<128x128xf32> to vector<128x128xbf16>
    %c0_17 = arith.constant 0 : index
    %c0_18 = arith.constant 0 : index
    %c0_19 = arith.constant 0 : index
    %27 = vector.load %arg4[%c0_17, %c0_18, %c0_19] : memref<4x128x128xbf16, #tpu.memory_space<vmem>>, vector<1x128x128xbf16>
    %28 = vector.shape_cast %27 : vector<1x128x128xbf16> to vector<128x128xbf16>
    %cst_20 = arith.constant dense<0.000000e+00> : vector<128x128xf32>
    %29 = tpu.matmul %26, %28, %cst_20 {dimension_numbers = #tpu.dot_dimension_numbers<[1], [0], [0], [1], [0, 0, 1, 1], [], []>} : vector<128x128xbf16>, vector<128x128xbf16>, vector<128x128xf32> -> vector<128x128xf32>
    %30 = vector.broadcast %2 : vector<1x128xf32> to vector<128x128xf32>
    %31 = arith.addf %29, %30 : vector<128x128xf32>
    %cst_21 = arith.constant 0.000000e+00 : f32
    %32 = vector.broadcast %cst_21 : f32 to vector<128x128xf32>
    %33 = arith.maximumf %31, %32 : vector<128x128xf32>
    %34 = arith.truncf %33 : vector<128x128xf32> to vector<128x128xbf16>
    %c1 = arith.constant 1 : index
    %c0_22 = arith.constant 0 : index
    %c0_23 = arith.constant 0 : index
    %35 = vector.load %arg4[%c1, %c0_22, %c0_23] : memref<4x128x128xbf16, #tpu.memory_space<vmem>>, vector<1x128x128xbf16>
    %36 = vector.shape_cast %35 : vector<1x128x128xbf16> to vector<128x128xbf16>
    %cst_24 = arith.constant dense<0.000000e+00> : vector<128x128xf32>
    %37 = tpu.matmul %34, %36, %cst_24 {dimension_numbers = #tpu.dot_dimension_numbers<[1], [0], [0], [1], [0, 0, 1, 1], [], []>} : vector<128x128xbf16>, vector<128x128xbf16>, vector<128x128xf32> -> vector<128x128xf32>
    %38 = vector.broadcast %3 : vector<1x128xf32> to vector<128x128xf32>
    %39 = arith.addf %37, %38 : vector<128x128xf32>
    %cst_25 = arith.constant 0.000000e+00 : f32
    %40 = vector.broadcast %cst_25 : f32 to vector<128x128xf32>
    %41 = arith.subf %40, %39 : vector<128x128xf32>
    %42 = math.exp %41 : vector<128x128xf32>
    %cst_26 = arith.constant 1.000000e+00 : f32
    %43 = vector.broadcast %cst_26 : f32 to vector<128x128xf32>
    %44 = arith.addf %43, %42 : vector<128x128xf32>
    %45 = tpu.reciprocal %44 {approx = true} : vector<128x128xf32> -> vector<128x128xf32>
    %cst_27 = arith.constant 0.000000e+00 : f32
    %46 = vector.broadcast %cst_27 : f32 to vector<128x128xf32>
    %47 = arith.subf %46, %45 : vector<128x128xf32>
    %48 = math.exp %47 : vector<128x128xf32>
    %cst_28 = arith.constant 1.000000e+00 : f32
    %49 = vector.broadcast %cst_28 : f32 to vector<128x128xf32>
    %50 = arith.addf %49, %48 : vector<128x128xf32>
    %51 = tpu.reciprocal %50 {approx = true} : vector<128x128xf32> -> vector<128x128xf32>
    %52 = arith.mulf %25, %51 : vector<128x128xf32>
    %53 = arith.truncf %52 : vector<128x128xf32> to vector<128x128xbf16>
    %c2 = arith.constant 2 : index
    %c0_29 = arith.constant 0 : index
    %c0_30 = arith.constant 0 : index
    %54 = vector.load %arg4[%c2, %c0_29, %c0_30] : memref<4x128x128xbf16, #tpu.memory_space<vmem>>, vector<1x128x128xbf16>
    %55 = vector.shape_cast %54 : vector<1x128x128xbf16> to vector<128x128xbf16>
    %cst_31 = arith.constant dense<0.000000e+00> : vector<128x128xf32>
    %56 = tpu.matmul %53, %55, %cst_31 {dimension_numbers = #tpu.dot_dimension_numbers<[1], [0], [0], [1], [0, 0, 1, 1], [], []>} : vector<128x128xbf16>, vector<128x128xbf16>, vector<128x128xf32> -> vector<128x128xf32>
    %57 = vector.broadcast %4 : vector<1x128xf32> to vector<128x128xf32>
    %58 = arith.addf %56, %57 : vector<128x128xf32>
    %cst_32 = arith.constant 0.000000e+00 : f32
    %59 = vector.broadcast %cst_32 : f32 to vector<128x128xf32>
    %60 = arith.cmpf oge, %58, %59 : vector<128x128xf32>
    %cst_33 = arith.constant 2.000000e-01 : f32
    %61 = vector.broadcast %cst_33 : f32 to vector<128x128xf32>
    %62 = arith.mulf %61, %58 : vector<128x128xf32>
    %63 = arith.select %60, %58, %62 : vector<128x128xi1>, vector<128x128xf32>
    %64 = arith.truncf %63 : vector<128x128xf32> to vector<128x128xbf16>
    %c3 = arith.constant 3 : index
    %c0_34 = arith.constant 0 : index
    %c0_35 = arith.constant 0 : index
    %65 = vector.load %arg4[%c3, %c0_34, %c0_35] : memref<4x128x128xbf16, #tpu.memory_space<vmem>>, vector<1x128x128xbf16>
    %66 = vector.shape_cast %65 : vector<1x128x128xbf16> to vector<128x128xbf16>
    %cst_36 = arith.constant dense<0.000000e+00> : vector<128x128xf32>
    %67 = tpu.matmul %64, %66, %cst_36 {dimension_numbers = #tpu.dot_dimension_numbers<[1], [0], [0], [1], [0, 0, 1, 1], [], []>} : vector<128x128xbf16>, vector<128x128xbf16>, vector<128x128xf32> -> vector<128x128xf32>
    %68 = vector.broadcast %5 : vector<1x128xf32> to vector<128x128xf32>
    %69 = arith.addf %67, %68 : vector<128x128xf32>
    %c0_37 = arith.constant 0 : index
    %c0_38 = arith.constant 0 : index
    %70 = vector.load %arg6[%c0_37, %c0_38] : memref<128x128xf32, #tpu.memory_space<vmem>>, vector<128x128xf32>
    tpu.vector_store %arg6[%c0_37, %c0_38], %69 {strides = array<i32>} : memref<128x128xf32, #tpu.memory_space<vmem>>, vector<128x128xf32>,
    return
  }
  func.func @transform_0(%arg0: i32) -> (i32, i32) {
    %c0_i32 = arith.constant 0 : i32
    %c0_i32_0 = arith.constant 0 : i32
    return %arg0, %c0_i32 : i32, i32
  }
  func.func @transform_1(%arg0: i32) -> (i32, i32) {
    %c0_i32 = arith.constant 0 : i32
    %c0_i32_0 = arith.constant 0 : i32
    %c0_i32_1 = arith.constant 0 : i32
    return %c0_i32, %c0_i32_0 : i32, i32
  }
  func.func @transform_2(%arg0: i32) -> (i32, i32) {
    %c0_i32 = arith.constant 0 : i32
    %c0_i32_0 = arith.constant 0 : i32
    %c0_i32_1 = arith.constant 0 : i32
    return %c0_i32, %c0_i32_0 : i32, i32
  }
  func.func @transform_3(%arg0: i32) -> (i32, i32, i32) {
    %c0_i32 = arith.constant 0 : i32
    %c0_i32_0 = arith.constant 0 : i32
    %c0_i32_1 = arith.constant 0 : i32
    %c0_i32_2 = arith.constant 0 : i32
    return %c0_i32, %c0_i32_0, %c0_i32_1 : i32, i32, i32
  }
  func.func @transform_4(%arg0: i32) -> (i32, i32) {
    %c0_i32 = arith.constant 0 : i32
    %c0_i32_0 = arith.constant 0 : i32
    %c0_i32_1 = arith.constant 0 : i32
    return %c0_i32, %c0_i32_0 : i32, i32
  }
  func.func @transform_5(%arg0: i32) -> (i32, i32) {
    %c0_i32 = arith.constant 0 : i32
    %c0_i32_0 = arith.constant 0 : i32
    return %arg0, %c0_i32 : i32, i32
  }
}

</mosaic_0001>

<bundles_post_ra>
// kernel: mlp_classifier_forward.1
= control target key start
LH: loop header
LB: loop body
LE: loop exit
PB: predicated region body
PF: predicated region fallthrough
CT: control target
= control target key end

     0   :  { %s2573_s18 = smov 0   ;;  %s2994_s0 = inlined_call_operand.vmem [shape: bf16[256,128], index: 0, kind: input, shape index: {}]   ;;  %s2995_s1 = inlined_call_operand.vmem [shape: bf16[128,256], index: 1, kind: input, shape index: {}]   ;;  %s2996_s2 = inlined_call_operand.vmem [shape: bf16[256,128], index: 2, kind: input, shape index: {}]   ;;  %s2997_s3 = inlined_call_operand.vmem [shape: bf16[4,128,128], index: 3, kind: input, shape index: {}]   ;;  %s2998_s4 = inlined_call_operand.vmem [shape: f32[1,896], index: 4, kind: input, shape index: {}]   ;;  %s2999_s5 = inlined_call_operand.vmem [shape: f32[256,128], index: 5, kind: output, shape index: {}]  }
   0x1 LB: > { %s1925_s19 = sadd.s32 4294967295, %s2540_s18   ;;  %p1929_p0 = scmp.ge.s32.totalorder %s2540_s18, 1  ;;  %s2540_s18 = sphi %s2573_s18, %s15_s18  }
   0x2   : > { %p188_p1 = scmp.lt.s32.totalorder %s2540_s18, 3 }
   0x4   : > { %p189_p2 = pnand %p1929_p0, %p188_p1 }
   0x5   : > { %v2326_v0 = vld [vmem:[%s2995_s1 + $0x4] ss:$8 sps:$4 sm:$0xff] (!%p189_p2)   ;;  %s1930_s22 = sshll.u32 (!%p189_p2), %s1925_s19, 4  ;;  %v2328_v1 = vld [vmem:[%s2995_s1] ss:$8 sps:$4 sm:$0xff] (!%p189_p2)   ;;  %v2542_v2 = vmov (!%p189_p2), 0   ;;  %v268_v44 = vlaneseq (!%p189_p2) }
   0x6   : > { %192 = sbr.rel (%p189_p2) target bundleno = 1491 (0x5d3), region = 40  ;;  %438 = vmatprep.mubr.bf16.mxu0 (!%p189_p2), %v2542_v2  ;;  %p217_p3 = scmp.lt.s32.totalorder (!%p189_p2), %s1930_s22, 31  ;;  %406 = vmatprep.subr.bf16.mxu0 (!%p189_p2), %v2326_v0  ;;  %v2329_v3 = vld [vmem:[%s2995_s1 + $0x14] ss:$8 sps:$4 sm:$0xff] (!%p189_p2)   ;;  %v2331_v4 = vld [vmem:[%s2995_s1 + $0x10] ss:$8 sps:$4 sm:$0xff] (!%p189_p2)  }
   0x7   : > { %407 = vmatpush1.bf16.msra.mxu0 (!%p189_p2), %v2328_v1  ;;  %v2332_v5 = vld [vmem:[%s2995_s1 + $0x24] ss:$8 sps:$4 sm:$0xff] (!%p189_p2)   ;;  %v2334_v6 = vld [vmem:[%s2995_s1 + $0x20] ss:$8 sps:$4 sm:$0xff] (!%p189_p2)   ;;  %v2335_v7 = vld [vmem:[%s2995_s1 + $0x34] ss:$8 sps:$4 sm:$0xff] (!%p189_p2)  }
   0x8   : > { %408 = vmatprep.subr.bf16.mxu0 (!%p189_p2), %v2329_v3  ;;  %v2337_v8 = vld [vmem:[%s2995_s1 + $0x30] ss:$8 sps:$4 sm:$0xff] (!%p189_p2)   ;;  %v2338_v9 = vld [vmem:[%s2995_s1 + $0x44] ss:$8 sps:$4 sm:$0xff] (!%p189_p2)   ;;  %v2340_v10 = vld [vmem:[%s2995_s1 + $0x40] ss:$8 sps:$4 sm:$0xff] (!%p189_p2)  }
   0x9   : > { %v2341_v11 = vld [vmem:[%s2995_s1 + $0x54] ss:$8 sps:$4 sm:$0xff] (!%p189_p2)   ;;  %v2343_v12 = vld [vmem:[%s2995_s1 + $0x50] ss:$8 sps:$4 sm:$0xff] (!%p189_p2)   ;;  %v2344_v13 = vld [vmem:[%s2995_s1 + $0x64] ss:$8 sps:$4 sm:$0xff] (!%p189_p2)  }
   0xa   : > { %v2358_v14 = vld [vmem:[%s2996_s2 + $0x40] sm:$0xff] (!%p189_p2)   ;;  %v2360_v17 = vld [vmem:[%s2996_s2 + $0x48] sm:$0xff] (!%p189_p2)   ;;  %v2362_v19 = vld [vmem:[%s2996_s2 + $0x50] sm:$0xff] (!%p189_p2)   ;;  %v269_v45 = vshrl.u32 (!%p189_p2), %v268_v44, 7 }
   0xb   : > { %409 = vmatpush1.bf16.msra.mxu0 (!%p189_p2), %v2331_v4  ;;  %v2359_v15 = vld [vmem:[%s2996_s2] sm:$0xff] (!%p189_p2)   ;;  %2061 = vmatprep.subr.bf16.mxu1 (!%p189_p2), %v2358_v14  ;;  %v2361_v18 = vld [vmem:[%s2996_s2 + $0x8] sm:$0xff] (!%p189_p2)   ;;  %v2347_v20 = vld [vmem:[%s2995_s1 + $0x74] ss:$8 sps:$4 sm:$0xff] (!%p189_p2)  }
   0xc   : > { %410 = vmatprep.subr.bf16.mxu0 (!%p189_p2), %v2332_v5  ;;  %v2346_v16 = vld [vmem:[%s2995_s1 + $0x60] ss:$8 sps:$4 sm:$0xff] (!%p189_p2)   ;;  %2062 = vmatpush3.bf16.msra.mxu1 (!%p189_p2), %v2359_v15  ;;  %v2349_v21 = vld [vmem:[%s2995_s1 + $0x70] ss:$8 sps:$4 sm:$0xff] (!%p189_p2)   ;;  %v270_v46 = vsub.s32 (!%p189_p2), 0, %v269_v45  ;;  %v274_v48 = vsub.s32 (!%p189_p2), 1, %v269_v45 }
   0xd   : > { %s3001_s22 = smov (!%p217_p3, %s1930_s22), 31  ;;  %2063 = vmatprep.subr.bf16.mxu1 %v2360_v17  ;;  %v2363_v22 = vld [vmem:[%s2996_s2 + $0x10] sm:$0xff]   ;;  %v2364_v23 = vld [vmem:[%s2996_s2 + $0x58] sm:$0xff]   ;;  %v2366_v26 = vld [vmem:[%s2996_s2 + $0x60] sm:$0xff]  }
   0xe   : > { %s1931_s6 = sshll.u32 %s3001_s22, 2  ;;  %v2365_v25 = vld [vmem:[%s2996_s2 + $0x18] sm:$0xff]   ;;  %v2367_v27 = vld [vmem:[%s2996_s2 + $0x20] sm:$0xff]   ;;  %v2368_v35 = vld [vmem:[%s2996_s2 + $0x68] sm:$0xff]   ;;  %s1933_s26 = sshll.u32 %s3001_s22, 3 }
   0xf   : > { %s2609_s13 = scalar_lea.vmem %s2994_s0, %s1931_s6  ;;  %411 = vmatpush1.bf16.msra.mxu0 %v2334_v6  ;;  %v2369_v36 = vld [vmem:[%s2996_s2 + $0x28] sm:$0xff]   ;;  %v2370_v37 = vld [vmem:[%s2996_s2 + $0x70] sm:$0xff]   ;;  %v2372_v39 = vld [vmem:[%s2996_s2 + $0x78] sm:$0xff]   ;;  %s2973_s6 = scalar_lea.vmem %s2999_s5, %s1933_s26 }
  0x10   : > { %412 = vmatprep.subr.bf16.mxu0 %v2335_v7  ;;  %2064 = vmatpush3.bf16.msra.mxu1 %v2361_v18  ;;  %v2350_v24 = vld [vmem:[%s2609_s13] sm:$0xff]   ;;  %v2351_v28 = vld [vmem:[%s2609_s13 + $0x8] sm:$0xff]   ;;  %v2352_v29 = vld [vmem:[%s2609_s13 + $0x10] sm:$0xff]  }
  0x11   : > { %2065 = vmatprep.subr.bf16.mxu1 %v2362_v19  ;;  %v2353_v30 = vld [vmem:[%s2609_s13 + $0x18] sm:$0xff]   ;;  %v2354_v31 = vld [vmem:[%s2609_s13 + $0x20] sm:$0xff]   ;;  %v2355_v32 = vld [vmem:[%s2609_s13 + $0x28] sm:$0xff]  }
  0x12   : > { %v2356_v33 = vld [vmem:[%s2609_s13 + $0x30] sm:$0xff]   ;;  %v2357_v34 = vld [vmem:[%s2609_s13 + $0x38] sm:$0xff]   ;;  %v2374_v41 = vld [vmem:[%s2997_s3] sm:$0xff]  }
  0x13   : > { %413 = vmatpush1.bf16.msra.mxu0 %v2337_v8  ;;  %v2371_v38 = vld [vmem:[%s2996_s2 + $0x30] sm:$0xff]   ;;  %v2373_v40 = vld [vmem:[%s2996_s2 + $0x38] sm:$0xff]   ;;  %v2375_v42 = vld [vmem:[%s2997_s3 + $0x8] sm:$0xff]  }
  0x14   : > { %414 = vmatprep.subr.bf16.mxu0 %v2338_v9  ;;  %2066 = vmatpush3.bf16.msra.mxu1 %v2363_v22  ;;  %v2376_v43 = vld [vmem:[%s2997_s3 + $0x10] sm:$0xff]   ;;  %v229_v47 = vld [vmem:[%s2998_s4] sm:$0x3] }
  0x15   : > { %2067 = vmatprep.subr.bf16.mxu1 %v2364_v23  ;;  %v2713_v49 = vrot.slane %v229_v47, %v270_v46  ;;  %v2715_v50 = vrot.slane %v229_v47, %v274_v48 }
  0x17   : > { %415 = vmatpush1.bf16.msra.mxu0 %v2340_v10 }
  0x18   : > { %416 = vmatprep.subr.bf16.mxu0 %v2341_v11  ;;  %2068 = vmatpush3.bf16.msra.mxu1 %v2365_v25 }
  0x19   : > { %2069 = vmatprep.subr.bf16.mxu1 %v2366_v26 }
  0x1b   : > { %417 = vmatpush1.bf16.msra.mxu0 %v2343_v12 }
  0x1c   : > { %418 = vmatprep.subr.bf16.mxu0 %v2344_v13  ;;  %2070 = vmatpush3.bf16.msra.mxu1 %v2367_v27 }
  0x1d   : > { %2071 = vmatprep.subr.bf16.mxu1 %v2368_v35 }
  0x1f   : > { %419 = vmatpush1.bf16.msra.mxu0 %v2346_v16 }
  0x20   : > { %420 = vmatprep.subr.bf16.mxu0 %v2347_v20  ;;  %2072 = vmatpush3.bf16.msra.mxu1 %v2369_v36 }
  0x21   : > { %2073 = vmatprep.subr.bf16.mxu1 %v2370_v37 }
  0x23   : > { %421 = vmatpush1.bf16.msra.mxu0 %v2349_v21 }
  0x24   : > { %2074 = vmatpush3.bf16.msra.mxu1 %v2371_v38  ;;  %2189 = vmatprep.subr.bf16.mxu0 %v2374_v41 }
  0x25   : > { %2075 = vmatprep.subr.bf16.mxu1 %v2372_v39 }
  0x26   : > { %439 = vmatmul.mubr.bf16.vlgmr.msra.gmra.mrb[0].mxu0 %v2350_v24 }
  0x27   : > { %448 = vmatprep.mubr.bf16.mxu0 %v2542_v2  ;;  %2190 = vmatpush3.bf16.msra.mxu0 %v2374_v41 }
  0x28   : > { %2076 = vmatpush3.bf16.msra.mxu1 %v2373_v40  ;;  %2191 = vmatprep.subr.bf16.mxu0 %v2375_v42 }
  0x2b   : > { %2192 = vmatpush3.bf16.msra.mxu0 %v2375_v42 }
  0x2c   : > { %2193 = vmatprep.subr.bf16.mxu0 %v2376_v43 }
  0x2e   : > { %449 = vmatmul.mubr.bf16.gmra.mrb[4].mxu0 %v2351_v28 }
  0x2f   : > { %458 = vmatprep.mubr.bf16.mxu0 %v2542_v2  ;;  %2194 = vmatpush3.bf16.msra.mxu0 %v2376_v43 }
  0x36   : > { %459 = vmatmul.mubr.bf16.gmra.mrb[8].mxu0 %v2352_v29 }
  0x37   : > { %468 = vmatprep.mubr.bf16.mxu0 %v2542_v2 }
  0x3e   : > { %469 = vmatmul.mubr.bf16.gmra.mrb[12].mxu0 %v2353_v30 }
  0x3f   : > { %478 = vmatprep.mubr.bf16.mxu0 %v2542_v2 }
  0x46   : > { %479 = vmatmul.mubr.bf16.gmra.mrb[16].mxu0 %v2354_v31 }
  0x47   : > { %488 = vmatprep.mubr.bf16.mxu0 %v2542_v2 }
  0x4e   : > { %489 = vmatmul.mubr.bf16.gmra.mrb[20].mxu0 %v2355_v32 }
  0x4f   : > { %498 = vmatprep.mubr.bf16.mxu0 %v2542_v2 }
  0x56   : > { %499 = vmatmul.mubr.bf16.gmra.mrb[24].mxu0 %v2356_v33 }
  0x57   : > { %508 = vmatprep.mubr.bf16.mxu0 %v2542_v2 }
  0x5e   : > { %509 = vmatmul.mubr.bf16.gmra.mrb[28].mxu0 %v2357_v34 }
  0xf9   : > { %v440_v51 = vpop.f32.mrb[0].mxu0 }
  0xfa   : > { %v441_v52 = vadd.f32 %v440_v51, %v2713_v49  ;;  %v442_v53 = vpop.f32.mrb[1].mxu0 }
  0xfb   : > { %v443_v54 = vadd.f32 %v442_v53, %v2715_v50  ;;  %v444_v55 = vpop.f32.mrb[2].mxu0 }
  0xfc   : > { %v551_v56 = vmul.f32 0.2, %v441_v52  ;;  %v445_v57 = vadd.f32 %v444_v55, %v2713_v49  ;;  %v446_v58 = vpop.f32.mrb[3].mxu0  ;;  %vm519_vm0 = vcmp.ge.f32.partialorder %v441_v52, 0.0 }
  0xfd   : > { %v552_v59 = vmul.f32 0.2, %v443_v54  ;;  %v447_v60 = vadd.f32 %v446_v58, %v2715_v50  ;;  %vm520_vm2 = vcmp.ge.f32.partialorder %v443_v54, 0.0 }
  0xfe   : > { %vm521_vm1 = vcmp.ge.f32.partialorder %v445_v57, 0.0  ;;  %v553_v61 = vmul.f32 0.2, %v445_v57  ;;  %v583_v63 = vsel %vm519_vm0, %v441_v52, %v551_v56 }
  0xff   : > { %v554_v62 = vmul.f32 0.2, %v447_v60  ;;  %vm522_vm3 = vcmp.ge.f32.partialorder %v447_v60, 0.0  ;;  %v584_v2 = vsel %vm520_vm2, %v443_v54, %v552_v59 }
 0x100   : > { %v585_v0 = vsel %vm521_vm1, %v445_v57, %v553_v61 }
 0x101   : > { %v450_v1 = vpop.f32.mrb[4].mxu0  ;;  %v586_v3 = vsel %vm522_vm3, %v447_v60, %v554_v62  ;;  %v615_v4 = vpack.c.bf16 %v585_v0, %v583_v63 }
 0x102   : > { %v451_v5 = vadd.f32 %v450_v1, %v2713_v49  ;;  %v452_v6 = vpop.f32.mrb[5].mxu0  ;;  %v616_v7 = vpack.c.bf16 %v586_v3, %v584_v2 }
 0x103   : > { %v453_v8 = vadd.f32 %v452_v6, %v2715_v50  ;;  %v454_v9 = vpop.f32.mrb[6].mxu0 }
 0x104   : > { %v555_v10 = vmul.f32 0.2, %v451_v5  ;;  %v455_v11 = vadd.f32 %v454_v9, %v2713_v49  ;;  %v456_v12 = vpop.f32.mrb[7].mxu0  ;;  %797 = vmatprep.mubr.bf16.mxu1 %v616_v7  ;;  %vm523_vm4 = vcmp.ge.f32.partialorder %v451_v5, 0.0 }
 0x105   : > { %v556_v13 = vmul.f32 0.2, %v453_v8  ;;  %v457_v14 = vadd.f32 %v456_v12, %v2715_v50  ;;  %798 = vmatmul.mubr.bf16.vlgmr.msra.gmra.mrb[0].mxu1 %v615_v4  ;;  %vm524_vm5 = vcmp.ge.f32.partialorder %v453_v8, 0.0 }
 0x106   : > { %vm525_vm6 = vcmp.ge.f32.partialorder %v455_v11, 0.0  ;;  %v557_v15 = vmul.f32 0.2, %v455_v11  ;;  %v587_v17 = vsel %vm523_vm4, %v451_v5, %v555_v10 }
 0x107   : > { %vm526_vm7 = vcmp.ge.f32.partialorder %v457_v14, 0.0  ;;  %v558_v16 = vmul.f32 0.2, %v457_v14  ;;  %v588_v20 = vsel %vm524_vm5, %v453_v8, %v556_v13 }
 0x108   : > { %v589_v18 = vsel %vm525_vm6, %v455_v11, %v557_v15 }
 0x109   : > { %v460_v19 = vpop.f32.mrb[8].mxu0  ;;  %v590_v21 = vsel %vm526_vm7, %v457_v14, %v558_v16  ;;  %v617_v22 = vpack.c.bf16 %v589_v18, %v587_v17 }
 0x10a   : > { %v461_v23 = vadd.f32 %v460_v19, %v2713_v49  ;;  %v462_v24 = vpop.f32.mrb[9].mxu0  ;;  %v618_v25 = vpack.c.bf16 %v590_v21, %v588_v20 }
 0x10b   : > { %v463_v26 = vadd.f32 %v462_v24, %v2715_v50  ;;  %v464_v27 = vpop.f32.mrb[10].mxu0 }
 0x10c   : > { %v559_v28 = vmul.f32 0.2, %v461_v23  ;;  %v465_v29 = vadd.f32 %v464_v27, %v2713_v49  ;;  %v466_v30 = vpop.f32.mrb[11].mxu0  ;;  %805 = vmatprep.mubr.bf16.mxu1 %v618_v25  ;;  %vm527_vm8 = vcmp.ge.f32.partialorder %v461_v23, 0.0 }
 0x10d   : > { %v560_v31 = vmul.f32 0.2, %v463_v26  ;;  %v467_v32 = vadd.f32 %v466_v30, %v2715_v50  ;;  %806 = vmatmul.mubr.bf16.gmra.mrb[4].mxu1 %v617_v22  ;;  %vm528_vm9 = vcmp.ge.f32.partialorder %v463_v26, 0.0 }
 0x10e   : > { %vm529_vm10 = vcmp.ge.f32.partialorder %v465_v29, 0.0  ;;  %v561_v33 = vmul.f32 0.2, %v465_v29  ;;  %v591_v35 = vsel %vm527_vm8, %v461_v23, %v559_v28 }
 0x10f   : > { %vm530_vm11 = vcmp.ge.f32.partialorder %v467_v32, 0.0  ;;  %v562_v34 = vmul.f32 0.2, %v467_v32  ;;  %v592_v38 = vsel %vm528_vm9, %v463_v26, %v560_v31 }
 0x110   : > { %v593_v36 = vsel %vm529_vm10, %v465_v29, %v561_v33 }
 0x111   : > { %v470_v37 = vpop.f32.mrb[12].mxu0  ;;  %v594_v39 = vsel %vm530_vm11, %v467_v32, %v562_v34  ;;  %v619_v40 = vpack.c.bf16 %v593_v36, %v591_v35 }
 0x112   : > { %v471_v41 = vadd.f32 %v470_v37, %v2713_v49  ;;  %v472_v42 = vpop.f32.mrb[13].mxu0  ;;  %v620_v43 = vpack.c.bf16 %v594_v39, %v592_v38 }
 0x113   : > { %v473_v44 = vadd.f32 %v472_v42, %v2715_v50  ;;  %v474_v45 = vpop.f32.mrb[14].mxu0 }
 0x114   : > { %v563_v46 = vmul.f32 0.2, %v471_v41  ;;  %v475_v47 = vadd.f32 %v474_v45, %v2713_v49  ;;  %v476_v48 = vpop.f32.mrb[15].mxu0  ;;  %813 = vmatprep.mubr.bf16.mxu1 %v620_v43  ;;  %vm531_vm12 = vcmp.ge.f32.partialorder %v471_v41, 0.0 }
 0x115   : > { %v564_v51 = vmul.f32 0.2, %v473_v44  ;;  %v477_v52 = vadd.f32 %v476_v48, %v2715_v50  ;;  %814 = vmatmul.mubr.bf16.gmra.mrb[8].mxu1 %v619_v40  ;;  %vm532_vm13 = vcmp.ge.f32.partialorder %v473_v44, 0.0 }
 0x116   : > { %vm533_vm14 = vcmp.ge.f32.partialorder %v475_v47, 0.0  ;;  %v565_v53 = vmul.f32 0.2, %v475_v47  ;;  %v595_v55 = vsel %vm531_vm12, %v471_v41, %v563_v46 }
 0x117   : > { %vm534_vm15 = vcmp.ge.f32.partialorder %v477_v52, 0.0  ;;  %v566_v54 = vmul.f32 0.2, %v477_v52  ;;  %v596_v58 = vsel %vm532_vm13, %v473_v44, %v564_v51 }
 0x118   : > { %v597_v56 = vsel %vm533_vm14, %v475_v47, %v565_v53 }
 0x119   : > { %v480_v57 = vpop.f32.mrb[16].mxu0  ;;  %v598_v59 = vsel %vm534_vm15, %v477_v52, %v566_v54  ;;  %v621_v60 = vpack.c.bf16 %v597_v56, %v595_v55 }
 0x11a   : > { %v481_v61 = vadd.f32 %v480_v57, %v2713_v49  ;;  %v482_v62 = vpop.f32.mrb[17].mxu0  ;;  %v622_v63 = vpack.c.bf16 %v598_v59, %v596_v58 }
 0x11b   : > { %v483_v0 = vadd.f32 %v482_v62, %v2715_v50  ;;  %v484_v1 = vpop.f32.mrb[18].mxu0 }
 0x11c   : > { %v567_v2 = vmul.f32 0.2, %v481_v61  ;;  %v485_v3 = vadd.f32 %v484_v1, %v2713_v49  ;;  %v486_v4 = vpop.f32.mrb[19].mxu0  ;;  %821 = vmatprep.mubr.bf16.mxu1 %v622_v63  ;;  %vm535_vm0 = vcmp.ge.f32.partialorder %v481_v61, 0.0 }
 0x11d   : > { %v568_v5 = vmul.f32 0.2, %v483_v0  ;;  %v487_v6 = vadd.f32 %v486_v4, %v2715_v50  ;;  %822 = vmatmul.mubr.bf16.gmra.mrb[12].mxu1 %v621_v60  ;;  %vm536_vm1 = vcmp.ge.f32.partialorder %v483_v0, 0.0 }
 0x11e   : > { %vm537_vm2 = vcmp.ge.f32.partialorder %v485_v3, 0.0  ;;  %v569_v7 = vmul.f32 0.2, %v485_v3  ;;  %v599_v9 = vsel %vm535_vm0, %v481_v61, %v567_v2 }
 0x11f   : > { %vm538_vm3 = vcmp.ge.f32.partialorder %v487_v6, 0.0  ;;  %v570_v8 = vmul.f32 0.2, %v487_v6  ;;  %v600_v12 = vsel %vm536_vm1, %v483_v0, %v568_v5 }
 0x120   : > { %v601_v10 = vsel %vm537_vm2, %v485_v3, %v569_v7  ;;  %v2379_v7 = vld [vmem:[%s2997_s3 + $0x28] sm:$0xff]  }
 0x121   : > { %v490_v11 = vpop.f32.mrb[20].mxu0  ;;  %v602_v13 = vsel %vm538_vm3, %v487_v6, %v570_v8  ;;  %v623_v14 = vpack.c.bf16 %v601_v10, %v599_v9  ;;  %v2380_v8 = vld [vmem:[%s2997_s3 + $0x30] sm:$0xff]   ;;  %v2381_v9 = vld [vmem:[%s2997_s3 + $0x38] sm:$0xff]   ;;  %v2382_v10 = vld [vmem:[%s2997_s3 + $0x40] sm:$0xff]  }
 0x122   : > { %v491_v15 = vadd.f32 %v490_v11, %v2713_v49  ;;  %v492_v16 = vpop.f32.mrb[21].mxu0  ;;  %v624_v17 = vpack.c.bf16 %v602_v13, %v600_v12  ;;  %v2383_v11 = vld [vmem:[%s2997_s3 + $0x48] sm:$0xff]   ;;  %2221 = vmatprep.subr.bf16.mxu1 %v2382_v10  ;;  %v2384_v12 = vld [vmem:[%s2997_s3 + $0x50] sm:$0xff]   ;;  %v2385_v13 = vld [vmem:[%s2997_s3 + $0x58] sm:$0xff]  }
 0x123   : > { %v493_v18 = vadd.f32 %v492_v16, %v2715_v50  ;;  %v494_v19 = vpop.f32.mrb[22].mxu0  ;;  %2222 = vmatpush3.bf16.msra.mxu1 %v2382_v10 }
 0x124   : > { %v571_v20 = vmul.f32 0.2, %v491_v15  ;;  %v495_v21 = vadd.f32 %v494_v19, %v2713_v49  ;;  %v496_v22 = vpop.f32.mrb[23].mxu0  ;;  %829 = vmatprep.mubr.bf16.mxu1 %v624_v17  ;;  %vm539_vm4 = vcmp.ge.f32.partialorder %v491_v15, 0.0  ;;  %2223 = vmatprep.subr.bf16.mxu1 %v2383_v11  ;;  %v2785_v17 = vld [vmem:[%s2998_s4 + $0x2] ss:$0 sm:$0xff] }
 0x125   : > { %v572_v23 = vmul.f32 0.2, %v493_v18  ;;  %v497_v24 = vadd.f32 %v496_v22, %v2715_v50  ;;  %830 = vmatmul.mubr.bf16.gmra.mrb[16].mxu1 %v623_v14  ;;  %vm540_vm5 = vcmp.ge.f32.partialorder %v493_v18, 0.0  ;;  %v2386_v14 = vld [vmem:[%s2997_s3 + $0x60] sm:$0xff]  }
 0x126   : > { %vm541_vm6 = vcmp.ge.f32.partialorder %v495_v21, 0.0  ;;  %v573_v25 = vmul.f32 0.2, %v495_v21  ;;  %v603_v27 = vsel %vm539_vm4, %v491_v15, %v571_v20  ;;  %v2387_v15 = vld [vmem:[%s2997_s3 + $0x68] sm:$0xff]  }
 0x127   : > { %vm542_vm7 = vcmp.ge.f32.partialorder %v497_v24, 0.0  ;;  %v574_v26 = vmul.f32 0.2, %v497_v24  ;;  %v604_v30 = vsel %vm540_vm5, %v493_v18, %v572_v23  ;;  %2224 = vmatpush3.bf16.msra.mxu1 %v2383_v11 }
 0x128   : > { %v605_v28 = vsel %vm541_vm6, %v495_v21, %v573_v25  ;;  %2225 = vmatprep.subr.bf16.mxu1 %v2384_v12 }
 0x129   : > { %v500_v29 = vpop.f32.mrb[24].mxu0  ;;  %v606_v31 = vsel %vm542_vm7, %v497_v24, %v574_v26  ;;  %v625_v32 = vpack.c.bf16 %v605_v28, %v603_v27 }
 0x12a   : > { %v501_v33 = vadd.f32 %v500_v29, %v2713_v49  ;;  %v502_v34 = vpop.f32.mrb[25].mxu0  ;;  %v626_v35 = vpack.c.bf16 %v606_v31, %v604_v30 }
 0x12b   : > { %v503_v36 = vadd.f32 %v502_v34, %v2715_v50  ;;  %v504_v37 = vpop.f32.mrb[26].mxu0  ;;  %2226 = vmatpush3.bf16.msra.mxu1 %v2384_v12 }
 0x12c   : > { %v575_v38 = vmul.f32 0.2, %v501_v33  ;;  %v505_v39 = vadd.f32 %v504_v37, %v2713_v49  ;;  %v506_v40 = vpop.f32.mrb[27].mxu0  ;;  %837 = vmatprep.mubr.bf16.mxu1 %v626_v35  ;;  %vm543_vm8 = vcmp.ge.f32.partialorder %v501_v33, 0.0  ;;  %2227 = vmatprep.subr.bf16.mxu1 %v2385_v13 }
 0x12d   : > { %v576_v41 = vmul.f32 0.2, %v503_v36  ;;  %v507_v42 = vadd.f32 %v506_v40, %v2715_v50  ;;  %838 = vmatmul.mubr.bf16.gmra.mrb[20].mxu1 %v625_v32  ;;  %vm544_vm9 = vcmp.ge.f32.partialorder %v503_v36, 0.0 }
 0x12e   : > { %vm545_vm10 = vcmp.ge.f32.partialorder %v505_v39, 0.0  ;;  %v577_v43 = vmul.f32 0.2, %v505_v39  ;;  %v607_v45 = vsel %vm543_vm8, %v501_v33, %v575_v38 }
 0x12f   : > { %vm546_vm11 = vcmp.ge.f32.partialorder %v507_v42, 0.0  ;;  %v578_v44 = vmul.f32 0.2, %v507_v42  ;;  %v608_v48 = vsel %vm544_vm9, %v503_v36, %v576_v41  ;;  %2228 = vmatpush3.bf16.msra.mxu1 %v2385_v13 }
 0x130   : > { %v609_v46 = vsel %vm545_vm10, %v505_v39, %v577_v43  ;;  %2229 = vmatprep.subr.bf16.mxu1 %v2386_v14 }
 0x131   : > { %v510_v47 = vpop.f32.mrb[28].mxu0  ;;  %v610_v51 = vsel %vm546_vm11, %v507_v42, %v578_v44  ;;  %v627_v52 = vpack.c.bf16 %v609_v46, %v607_v45 }
 0x132   : > { %v511_v53 = vadd.f32 %v510_v47, %v2713_v49  ;;  %v512_v54 = vpop.f32.mrb[29].mxu0  ;;  %v628_v55 = vpack.c.bf16 %v610_v51, %v608_v48 }
 0x133   : > { %v513_v56 = vadd.f32 %v512_v54, %v2715_v50  ;;  %v514_v57 = vpop.f32.mrb[30].mxu0  ;;  %2230 = vmatpush3.bf16.msra.mxu1 %v2386_v14 }
 0x134   : > { %v579_v58 = vmul.f32 0.2, %v511_v53  ;;  %v515_v59 = vadd.f32 %v514_v57, %v2713_v49  ;;  %v516_v60 = vpop.f32.mrb[31].mxu0  ;;  %845 = vmatprep.mubr.bf16.mxu1 %v628_v55  ;;  %vm547_vm12 = vcmp.ge.f32.partialorder %v511_v53, 0.0  ;;  %v2377_v49 = vld [vmem:[%s2997_s3 + $0x18] sm:$0xff]   ;;  %2231 = vmatprep.subr.bf16.mxu1 %v2387_v15 }
 0x135   : > { %v580_v61 = vmul.f32 0.2, %v513_v56  ;;  %v517_v62 = vadd.f32 %v516_v60, %v2715_v50  ;;  %846 = vmatmul.mubr.bf16.gmra.mrb[24].mxu1 %v627_v52  ;;  %vm548_vm13 = vcmp.ge.f32.partialorder %v513_v56, 0.0  ;;  %2195 = vmatprep.subr.bf16.mxu0 %v2377_v49  ;;  %v2378_v50 = vld [vmem:[%s2997_s3 + $0x20] sm:$0xff]  }
 0x136   : > { %vm549_vm14 = vcmp.ge.f32.partialorder %v515_v59, 0.0  ;;  %v581_v63 = vmul.f32 0.2, %v515_v59  ;;  %v611_v1 = vsel %vm547_vm12, %v511_v53, %v579_v58  ;;  %2196 = vmatpush3.bf16.msra.mxu0 %v2377_v49 }
 0x137   : > { %vm550_vm15 = vcmp.ge.f32.partialorder %v517_v62, 0.0  ;;  %v582_v0 = vmul.f32 0.2, %v517_v62  ;;  %v612_v3 = vsel %vm548_vm13, %v513_v56, %v580_v61  ;;  %2197 = vmatprep.subr.bf16.mxu0 %v2378_v50  ;;  %2232 = vmatpush3.bf16.msra.mxu1 %v2387_v15 }
 0x138   : > { %v613_v2 = vsel %vm549_vm14, %v515_v59, %v581_v63 }
 0x139   : > { %v614_v4 = vsel %vm550_vm15, %v517_v62, %v582_v0  ;;  %v629_v5 = vpack.c.bf16 %v613_v2, %v611_v1 }
 0x13a   : > { %v630_v6 = vpack.c.bf16 %v614_v4, %v612_v3  ;;  %2198 = vmatpush3.bf16.msra.mxu0 %v2378_v50 }
 0x13b   : > { %2199 = vmatprep.subr.bf16.mxu0 %v2379_v7 }
 0x13c   : > { %853 = vmatprep.mubr.bf16.mxu1 %v630_v6 }
 0x13d   : > { %854 = vmatmul.mubr.bf16.gmra.mrb[28].mxu1 %v629_v5 }
 0x13e   : > { %2200 = vmatpush3.bf16.msra.mxu0 %v2379_v7 }
 0x13f   : > { %2201 = vmatprep.subr.bf16.mxu0 %v2380_v8 }
 0x142   : > { %2202 = vmatpush3.bf16.msra.mxu0 %v2380_v8 }
 0x143   : > { %2203 = vmatprep.subr.bf16.mxu0 %v2381_v9 }
 0x146   : > { %2204 = vmatpush3.bf16.msra.mxu0 %v2381_v9 }
 0x1d8   : > { %v2077_v16 = vpop.f32.mrb[0].mxu1 }
 0x1d9   : > { %v2078_v18 = vpop.f32.mrb[1].mxu1 }
 0x1da   : > { %v2079_v19 = vadd.f32 %v2078_v18, %v2077_v16  ;;  %v2080_v20 = vpop.f32.mrb[2].mxu1 }
 0x1db   : > { %v2081_v21 = vpop.f32.mrb[3].mxu1 }
 0x1dc   : > { %v800_v22 = vadd.f32 %v2079_v19, %v2785_v17  ;;  %v2082_v23 = vadd.f32 %v2081_v21, %v2080_v20 }
 0x1de   : > { %v878_v24 = vmul.f32 0.2, %v800_v22  ;;  %v803_v25 = vadd.f32 %v2082_v23, %v2785_v17  ;;  %vm862_vm0 = vcmp.ge.f32.partialorder %v800_v22, 0.0 }
 0x1e0   : > { %vm863_vm1 = vcmp.ge.f32.partialorder %v803_v25, 0.0  ;;  %v879_v26 = vmul.f32 0.2, %v803_v25  ;;  %v2083_v27 = vpop.f32.mrb[4].mxu1  ;;  %v2789_v31 = vsel %vm862_vm0, %v800_v22, %v878_v24 }
 0x1e1   : > { %v2084_v28 = vpop.f32.mrb[5].mxu1 }
 0x1e2   : > { %v2085_v29 = vadd.f32 %v2084_v28, %v2083_v27  ;;  %v2086_v30 = vpop.f32.mrb[6].mxu1  ;;  %v2791_v32 = vsel %vm863_vm1, %v803_v25, %v879_v26 }
 0x1e3   : > { %v2087_v33 = vpop.f32.mrb[7].mxu1  ;;  %v910_v34 = vpack.c.bf16 %v2791_v32, %v2789_v31 }
 0x1e4   : > { %v808_v35 = vadd.f32 %v2085_v29, %v2785_v17  ;;  %v2088_v36 = vadd.f32 %v2087_v33, %v2086_v30 }
 0x1e5   : > { %2205 = vmatprep.mubr.bf16.mxu0 %v910_v34 }
 0x1e6   : > { %v880_v37 = vmul.f32 0.2, %v808_v35  ;;  %v811_v38 = vadd.f32 %v2088_v36, %v2785_v17  ;;  %vm864_vm2 = vcmp.ge.f32.partialorder %v808_v35, 0.0 }
 0x1e8   : > { %vm865_vm3 = vcmp.ge.f32.partialorder %v811_v38, 0.0  ;;  %v881_v39 = vmul.f32 0.2, %v811_v38  ;;  %v2089_v40 = vpop.f32.mrb[8].mxu1  ;;  %v2797_v42 = vsel %vm864_vm2, %v808_v35, %v880_v37 }
 0x1e9   : > { %v2090_v41 = vpop.f32.mrb[9].mxu1 }
 0x1ea   : > { %v2799_v43 = vsel %vm865_vm3, %v811_v38, %v881_v39  ;;  %v2091_v44 = vadd.f32 %v2090_v41, %v2089_v40  ;;  %v2092_v45 = vpop.f32.mrb[10].mxu1 }
 0x1eb   : > { %v911_v46 = vpack.c.bf16 %v2799_v43, %v2797_v42  ;;  %v2093_v47 = vpop.f32.mrb[11].mxu1 }
 0x1ec   : > { %v816_v48 = vadd.f32 %v2091_v44, %v2785_v17  ;;  %v2094_v51 = vadd.f32 %v2093_v47, %v2092_v45 }
 0x1ed   : > { %2206 = vmatmul.mubr.bf16.vlgmr.msra.gmra.mrb[32].mxu0 %v911_v46 }
 0x1ee   : > { %v882_v52 = vmul.f32 0.2, %v816_v48  ;;  %v819_v53 = vadd.f32 %v2094_v51, %v2785_v17  ;;  %vm866_vm4 = vcmp.ge.f32.partialorder %v816_v48, 0.0 }
 0x1f0   : > { %vm867_vm5 = vcmp.ge.f32.partialorder %v819_v53, 0.0  ;;  %v883_v54 = vmul.f32 0.2, %v819_v53  ;;  %v2095_v55 = vpop.f32.mrb[12].mxu1  ;;  %v2805_v59 = vsel %vm866_vm4, %v816_v48, %v882_v52 }
 0x1f1   : > { %v2096_v56 = vpop.f32.mrb[13].mxu1 }
 0x1f2   : > { %v2097_v57 = vadd.f32 %v2096_v56, %v2095_v55  ;;  %v2098_v58 = vpop.f32.mrb[14].mxu1  ;;  %v2807_v60 = vsel %vm867_vm5, %v819_v53, %v883_v54 }
 0x1f3   : > { %v2099_v61 = vpop.f32.mrb[15].mxu1  ;;  %v912_v62 = vpack.c.bf16 %v2807_v60, %v2805_v59 }
 0x1f4   : > { %v824_v63 = vadd.f32 %v2097_v57, %v2785_v17  ;;  %v2100_v0 = vadd.f32 %v2099_v61, %v2098_v58 }
 0x1f5   : > { %2209 = vmatprep.mubr.bf16.mxu0 %v912_v62 }
 0x1f6   : > { %v884_v1 = vmul.f32 0.2, %v824_v63  ;;  %v827_v2 = vadd.f32 %v2100_v0, %v2785_v17  ;;  %vm868_vm6 = vcmp.ge.f32.partialorder %v824_v63, 0.0 }
 0x1f8   : > { %vm869_vm7 = vcmp.ge.f32.partialorder %v827_v2, 0.0  ;;  %v885_v3 = vmul.f32 0.2, %v827_v2  ;;  %v2101_v4 = vpop.f32.mrb[16].mxu1  ;;  %v2813_v50 = vsel %vm868_vm6, %v824_v63, %v884_v1 }
 0x1f9   : > { %v2102_v5 = vpop.f32.mrb[17].mxu1 }
 0x1fa   : > { %v2103_v6 = vadd.f32 %v2102_v5, %v2101_v4  ;;  %v2104_v49 = vpop.f32.mrb[18].mxu1  ;;  %v2815_v7 = vsel %vm869_vm7, %v827_v2, %v885_v3  ;;  %v2388_v2 = vld [vmem:[%s2997_s3 + $0x70] sm:$0xff]   ;;  %v1975_v3 = vld [vmem:[%s2998_s4 + $0x3] ss:$0 sm:$0xff] }
 0x1fb   : > { %v2105_v8 = vpop.f32.mrb[19].mxu1  ;;  %v913_v9 = vpack.c.bf16 %v2815_v7, %v2813_v50  ;;  %2233 = vmatprep.subr.bf16.mxu1 %v2388_v2 }
 0x1fc   : > { %v832_v10 = vadd.f32 %v2103_v6, %v2785_v17  ;;  %v2106_v11 = vadd.f32 %v2105_v8, %v2104_v49  ;;  %2234 = vmatpush3.bf16.msra.mxu1 %v2388_v2 }
 0x1fd   : > { %2210 = vmatmul.mubr.bf16.gmra.mrb[36].mxu0 %v913_v9 }
 0x1fe   : > { %v886_v12 = vmul.f32 0.2, %v832_v10  ;;  %v835_v13 = vadd.f32 %v2106_v11, %v2785_v17  ;;  %vm870_vm8 = vcmp.ge.f32.partialorder %v832_v10, 0.0 }
 0x200   : > { %vm871_vm9 = vcmp.ge.f32.partialorder %v835_v13, 0.0  ;;  %v887_v14 = vmul.f32 0.2, %v835_v13  ;;  %v2107_v15 = vpop.f32.mrb[20].mxu1  ;;  %v2821_v20 = vsel %vm870_vm8, %v832_v10, %v886_v12 }
 0x201   : > { %v2108_v16 = vpop.f32.mrb[21].mxu1 }
 0x202   : > { %v2109_v18 = vadd.f32 %v2108_v16, %v2107_v15  ;;  %v2110_v19 = vpop.f32.mrb[22].mxu1  ;;  %v2823_v21 = vsel %vm871_vm9, %v835_v13, %v887_v14 }
 0x203   : > { %v2111_v22 = vpop.f32.mrb[23].mxu1  ;;  %v914_v23 = vpack.c.bf16 %v2823_v21, %v2821_v20 }
 0x204   : > { %v840_v24 = vadd.f32 %v2109_v18, %v2785_v17  ;;  %v2112_v25 = vadd.f32 %v2111_v22, %v2110_v19 }
 0x205   : > { %2213 = vmatprep.mubr.bf16.mxu0 %v914_v23 }
 0x206   : > { %v888_v26 = vmul.f32 0.2, %v840_v24  ;;  %v843_v27 = vadd.f32 %v2112_v25, %v2785_v17  ;;  %vm872_vm10 = vcmp.ge.f32.partialorder %v840_v24, 0.0 }
 0x208   : > { %vm873_vm11 = vcmp.ge.f32.partialorder %v843_v27, 0.0  ;;  %v889_v28 = vmul.f32 0.2, %v843_v27  ;;  %v2113_v29 = vpop.f32.mrb[24].mxu1  ;;  %v2829_v35 = vsel %vm872_vm10, %v840_v24, %v888_v26 }
 0x209   : > { %v2114_v30 = vpop.f32.mrb[25].mxu1 }
 0x20a   : > { %v2115_v33 = vadd.f32 %v2114_v30, %v2113_v29  ;;  %v2116_v34 = vpop.f32.mrb[26].mxu1  ;;  %v2831_v36 = vsel %vm873_vm11, %v843_v27, %v889_v28 }
 0x20b   : > { %v2117_v37 = vpop.f32.mrb[27].mxu1  ;;  %v915_v38 = vpack.c.bf16 %v2831_v36, %v2829_v35 }
 0x20c   : > { %v848_v39 = vadd.f32 %v2115_v33, %v2785_v17  ;;  %v2118_v40 = vadd.f32 %v2117_v37, %v2116_v34 }
 0x20d   : > { %2214 = vmatmul.mubr.bf16.gmra.mrb[40].mxu0 %v915_v38 }
 0x20e   : > { %v890_v41 = vmul.f32 0.2, %v848_v39  ;;  %v851_v44 = vadd.f32 %v2118_v40, %v2785_v17  ;;  %vm874_vm12 = vcmp.ge.f32.partialorder %v848_v39, 0.0 }
 0x210   : > { %vm875_vm13 = vcmp.ge.f32.partialorder %v851_v44, 0.0  ;;  %v891_v45 = vmul.f32 0.2, %v851_v44  ;;  %v2119_v46 = vpop.f32.mrb[28].mxu1  ;;  %v2837_v52 = vsel %vm874_vm12, %v848_v39, %v890_v41 }
 0x211   : > { %v2120_v47 = vpop.f32.mrb[29].mxu1 }
 0x212   : > { %v2121_v48 = vadd.f32 %v2120_v47, %v2119_v46  ;;  %v2122_v51 = vpop.f32.mrb[30].mxu1  ;;  %v2839_v53 = vsel %vm875_vm13, %v851_v44, %v891_v45 }
 0x213   : > { %v2123_v54 = vpop.f32.mrb[31].mxu1  ;;  %v916_v55 = vpack.c.bf16 %v2839_v53, %v2837_v52 }
 0x214   : > { %v856_v56 = vadd.f32 %v2121_v48, %v2785_v17  ;;  %v2124_v57 = vadd.f32 %v2123_v54, %v2122_v51 }
 0x215   : > { %2217 = vmatprep.mubr.bf16.mxu0 %v916_v55 }
 0x216   : > { %v892_v58 = vmul.f32 0.2, %v856_v56  ;;  %v859_v61 = vadd.f32 %v2124_v57, %v2785_v17  ;;  %vm876_vm14 = vcmp.ge.f32.partialorder %v856_v56, 0.0  ;;  %v2389_v17 = vld [vmem:[%s2997_s3 + $0x78] sm:$0xff]  }
 0x217   : > { %2235 = vmatprep.subr.bf16.mxu1 %v2389_v17 }
 0x218   : > { %vm877_vm15 = vcmp.ge.f32.partialorder %v859_v61, 0.0  ;;  %v893_v62 = vmul.f32 0.2, %v859_v61  ;;  %v2845_v63 = vsel %vm876_vm14, %v856_v56, %v892_v58  ;;  %2236 = vmatpush3.bf16.msra.mxu1 %v2389_v17 }
 0x21a   : > { %v2847_v0 = vsel %vm877_vm15, %v859_v61, %v893_v62 }
 0x21b   : > { %v917_v1 = vpack.c.bf16 %v2847_v0, %v2845_v63 }
 0x21d   : > { %2218 = vmatmul.mubr.bf16.gmra.mrb[44].mxu0 %v917_v1 }
 0x2c0   : > { %v2207_v4 = vpop.f32.mrb[32].mxu0 }
 0x2c1   : > { %v1031_v5 = vadd.f32 %v2207_v4, %v1975_v3  ;;  %v1022_v6 = vpop.f32.mrb[33].mxu0 }
 0x2c2   : > { %v1023_v49 = vadd.f32 %v1975_v3, %v1022_v6  ;;  %v2208_v8 = vpop.f32.mrb[34].mxu0 }
 0x2c3   : > { %v1034_v9 = vadd.f32 %v2208_v8, %v1975_v3  ;;  %v1025_v10 = vpop.f32.mrb[35].mxu0  ;;  %v1087_v12 = vmax.f32 %v1031_v5, 0.0 }
 0x2c4   : > { %v1026_v11 = vadd.f32 %v1975_v3, %v1025_v10  ;;  %v1085_v14 = vmax.f32 %v1023_v49, 0.0 }
 0x2c5   : > { %v1088_v13 = vmax.f32 %v1034_v9, 0.0 }
 0x2c6   : > { %v1086_v15 = vmax.f32 %v1026_v11, 0.0 }
 0x2c7   : > { %v1102_v16 = vpack.c.bf16 %v1088_v13, %v1087_v12  ;;  %v2390_v13 = vld [vmem:[%s2997_s3 + $0x80] sm:$0xff]  }
 0x2c8   : > { %v1101_v18 = vpack.c.bf16 %v1086_v15, %v1085_v14  ;;  %2253 = vmatprep.subr.bf16.mxu0 %v2390_v13  ;;  %v2391_v14 = vld [vmem:[%s2997_s3 + $0x88] sm:$0xff]   ;;  %v2393_v15 = vld [vmem:[%s2997_s3 + $0x98] sm:$0xff]  }
 0x2c9   : > { %2254 = vmatpush3.bf16.msra.mxu0 %v2390_v13 }
 0x2ca   : > { %2237 = vmatprep.mubr.bf16.mxu1 %v1101_v18  ;;  %2255 = vmatprep.subr.bf16.mxu0 %v2391_v14  ;;  %v2395_v18 = vld [vmem:[%s2997_s3 + $0xa8] sm:$0xff]  }
 0x2cb   : > { %2238 = vmatmul.mubr.bf16.vlgmr.msra.gmra.mrb[32].mxu1 %v1102_v16  ;;  %v2394_v16 = vld [vmem:[%s2997_s3 + $0xa0] sm:$0xff]  }
 0x2cd   : > { %2256 = vmatpush3.bf16.msra.mxu0 %v2391_v14 }
 0x2d0   : > { %v2211_v19 = vpop.f32.mrb[36].mxu0 }
 0x2d1   : > { %v1047_v22 = vadd.f32 %v2211_v19, %v1975_v3  ;;  %v1038_v23 = vpop.f32.mrb[37].mxu0  ;;  %v2396_v19 = vld [vmem:[%s2997_s3 + $0xb0] sm:$0xff]  }
 0x2d2   : > { %v1039_v24 = vadd.f32 %v1975_v3, %v1038_v23  ;;  %v2212_v25 = vpop.f32.mrb[38].mxu0  ;;  %v2398_v23 = vld [vmem:[%s2997_s3 + $0xc0] sm:$0xff]  }
 0x2d3   : > { %v1050_v26 = vadd.f32 %v2212_v25, %v1975_v3  ;;  %v1041_v27 = vpop.f32.mrb[39].mxu0  ;;  %v1091_v29 = vmax.f32 %v1047_v22, 0.0  ;;  %v2397_v22 = vld [vmem:[%s2997_s3 + $0xb8] sm:$0xff]   ;;  %v2893_v25 = vld [vmem:[%s2998_s4 + $0x4] ss:$0 sm:$0xff]  ;;  %2285 = vmatprep.subr.bf16.mxu1 %v2398_v23 }
 0x2d4   : > { %v1042_v28 = vadd.f32 %v1975_v3, %v1041_v27  ;;  %v1089_v33 = vmax.f32 %v1039_v24, 0.0  ;;  %v2399_v24 = vld [vmem:[%s2997_s3 + $0xc8] sm:$0xff]   ;;  %2286 = vmatpush3.bf16.msra.mxu1 %v2398_v23  ;;  %v2400_v27 = vld [vmem:[%s2997_s3 + $0xd0] sm:$0xff]  }
 0x2d5   : > { %v1092_v30 = vmax.f32 %v1050_v26, 0.0  ;;  %2287 = vmatprep.subr.bf16.mxu1 %v2399_v24 }
 0x2d6   : > { %v1090_v34 = vmax.f32 %v1042_v28, 0.0 }
 0x2d7   : > { %v1104_v37 = vpack.c.bf16 %v1092_v30, %v1091_v29 }
 0x2d8   : > { %v1103_v38 = vpack.c.bf16 %v1090_v34, %v1089_v33  ;;  %2288 = vmatpush3.bf16.msra.mxu1 %v2399_v24 }
 0x2d9   : > { %2289 = vmatprep.subr.bf16.mxu1 %v2400_v27 }
 0x2da   : > { %2241 = vmatprep.mubr.bf16.mxu1 %v1103_v38 }
 0x2db   : > { %2242 = vmatmul.mubr.bf16.gmra.mrb[36].mxu1 %v1104_v37 }
 0x2dc   : > { %2290 = vmatpush3.bf16.msra.mxu1 %v2400_v27 }
 0x2e0   : > { %v2215_v39 = vpop.f32.mrb[40].mxu0 }
 0x2e1   : > { %v1063_v40 = vadd.f32 %v2215_v39, %v1975_v3  ;;  %v1054_v41 = vpop.f32.mrb[41].mxu0 }
 0x2e2   : > { %v1055_v44 = vadd.f32 %v1975_v3, %v1054_v41  ;;  %v2216_v45 = vpop.f32.mrb[42].mxu0  ;;  %v2401_v41 = vld [vmem:[%s2997_s3 + $0xd8] sm:$0xff]  }
 0x2e3   : > { %v1066_v46 = vadd.f32 %v2216_v45, %v1975_v3  ;;  %v1057_v47 = vpop.f32.mrb[43].mxu0  ;;  %v1095_v51 = vmax.f32 %v1063_v40, 0.0  ;;  %2291 = vmatprep.subr.bf16.mxu1 %v2401_v41 }
 0x2e4   : > { %v1058_v48 = vadd.f32 %v1975_v3, %v1057_v47  ;;  %v1093_v55 = vmax.f32 %v1055_v44, 0.0  ;;  %2292 = vmatpush3.bf16.msra.mxu1 %v2401_v41 }
 0x2e5   : > { %v1096_v54 = vmax.f32 %v1066_v46, 0.0 }
 0x2e6   : > { %v1094_v56 = vmax.f32 %v1058_v48, 0.0 }
 0x2e7   : > { %v1106_v57 = vpack.c.bf16 %v1096_v54, %v1095_v51  ;;  %v2402_v54 = vld [vmem:[%s2997_s3 + $0xe0] sm:$0xff]  }
 0x2e8   : > { %v1105_v58 = vpack.c.bf16 %v1094_v56, %v1093_v55  ;;  %2293 = vmatprep.subr.bf16.mxu1 %v2402_v54 }
 0x2e9   : > { %2294 = vmatpush3.bf16.msra.mxu1 %v2402_v54 }
 0x2ea   : > { %2245 = vmatprep.mubr.bf16.mxu1 %v1105_v58 }
 0x2eb   : > { %2246 = vmatmul.mubr.bf16.gmra.mrb[40].mxu1 %v1106_v57 }
 0x2f0   : > { %v2219_v61 = vpop.f32.mrb[44].mxu0 }
 0x2f1   : > { %v1079_v62 = vadd.f32 %v2219_v61, %v1975_v3  ;;  %v1070_v1 = vpop.f32.mrb[45].mxu0 }
 0x2f2   : > { %v1071_v2 = vadd.f32 %v1975_v3, %v1070_v1  ;;  %v2220_v17 = vpop.f32.mrb[46].mxu0 }
 0x2f3   : > { %v1082_v4 = vadd.f32 %v2220_v17, %v1975_v3  ;;  %v1073_v5 = vpop.f32.mrb[47].mxu0  ;;  %v1099_v49 = vmax.f32 %v1079_v62, 0.0 }
 0x2f4   : > { %v1074_v6 = vadd.f32 %v1975_v3, %v1073_v5  ;;  %v1097_v9 = vmax.f32 %v1071_v2, 0.0  ;;  %v2392_v3 = vld [vmem:[%s2997_s3 + $0x90] sm:$0xff]  }
 0x2f5   : > { %v1100_v8 = vmax.f32 %v1082_v4, 0.0  ;;  %2257 = vmatprep.subr.bf16.mxu0 %v2392_v3 }
 0x2f6   : > { %v1098_v10 = vmax.f32 %v1074_v6, 0.0  ;;  %2258 = vmatpush3.bf16.msra.mxu0 %v2392_v3 }
 0x2f7   : > { %v1108_v11 = vpack.c.bf16 %v1100_v8, %v1099_v49  ;;  %2259 = vmatprep.subr.bf16.mxu0 %v2393_v15 }
 0x2f8   : > { %v1107_v12 = vpack.c.bf16 %v1098_v10, %v1097_v9 }
 0x2fa   : > { %2249 = vmatprep.mubr.bf16.mxu1 %v1107_v12  ;;  %2260 = vmatpush3.bf16.msra.mxu0 %v2393_v15 }
 0x2fb   : > { %2250 = vmatmul.mubr.bf16.gmra.mrb[44].mxu1 %v1108_v11  ;;  %2261 = vmatprep.subr.bf16.mxu0 %v2394_v16 }
 0x2fe   : > { %2262 = vmatpush3.bf16.msra.mxu0 %v2394_v16 }
 0x2ff   : > { %2263 = vmatprep.subr.bf16.mxu0 %v2395_v18 }
 0x302   : > { %2264 = vmatpush3.bf16.msra.mxu0 %v2395_v18 }
 0x303   : > { %2265 = vmatprep.subr.bf16.mxu0 %v2396_v19 }
 0x306   : > { %2266 = vmatpush3.bf16.msra.mxu0 %v2396_v19 }
 0x307   : > { %2267 = vmatprep.subr.bf16.mxu0 %v2397_v22 }
 0x30a   : > { %2268 = vmatpush3.bf16.msra.mxu0 %v2397_v22 }
 0x39e   : > { %v2239_v26 = vpop.f32.mrb[32].mxu1 }
 0x39f   : > { %v1223_v28 = vadd.f32 %v2239_v26, %v2893_v25  ;;  %v1214_v29 = vpop.f32.mrb[33].mxu1 }
 0x3a0   : > { %v1215_v30 = vadd.f32 %v2893_v25, %v1214_v29  ;;  %v2240_v33 = vpop.f32.mrb[34].mxu1 }
 0x3a1   : > { %v1279_v34 = vsub.f32 0.0, %v1223_v28  ;;  %v1226_v37 = vadd.f32 %v2240_v33, %v2893_v25  ;;  %v1217_v38 = vpop.f32.mrb[35].mxu1 }
 0x3a2   : > { %v1277_v39 = vsub.f32 0.0, %v1215_v30  ;;  %v1218_v40 = vadd.f32 %v2893_v25, %v1217_v38 }
 0x3a3   : > { %v1297_v44 = vmul.f32 1.442695, %v1279_v34  ;;  %v1280_v45 = vsub.f32 0.0, %v1226_v37 }
 0x3a4   : > { %v1293_v46 = vmul.f32 1.442695, %v1277_v39  ;;  %v1278_v47 = vsub.f32 0.0, %v1218_v40 }
 0x3a5   : > { %2406 = vpow2.f32 %v1297_v44  ;;  %v1299_v48 = vmul.f32 1.442695, %v1280_v45 }
 0x3a6   : > { %2408 = vpow2.f32 %v1293_v46  ;;  %v1295_v51 = vmul.f32 1.442695, %v1278_v47 }
 0x3a7   : > { %2410 = vpow2.f32 %v1299_v48 }
 0x3a8   : > { %2412 = vpow2.f32 %v1295_v51 }
 0x3ae   : > { %v2243_v55 = vpop.f32.mrb[36].mxu1 }
 0x3af   : > { %v2407_v56 = vpop.eup %2406  ;;  %v1239_v57 = vadd.f32 %v2243_v55, %v2893_v25  ;;  %v1230_v58 = vpop.f32.mrb[37].mxu1 }
 0x3b0   : > { %v2409_v61 = vpop.eup %2408  ;;  %v1327_v62 = vadd.f32 1.0, %v2407_v56  ;;  %v1231_v1 = vadd.f32 %v2893_v25, %v1230_v58  ;;  %v2244_v2 = vpop.f32.mrb[38].mxu1 }
 0x3b1   : > { %v2411_v17 = vpop.eup %2410  ;;  %v1325_v4 = vadd.f32 1.0, %v2409_v61  ;;  %v1283_v5 = vsub.f32 0.0, %v1239_v57  ;;  %v1242_v6 = vadd.f32 %v2244_v2, %v2893_v25  ;;  %v1233_v49 = vpop.f32.mrb[39].mxu1 }
 0x3b2   : > { %v2413_v8 = vpop.eup %2412  ;;  %2414 = vrcp.f32 %v1327_v62  ;;  %v1328_v9 = vadd.f32 1.0, %v2411_v17  ;;  %v1281_v10 = vsub.f32 0.0, %v1231_v1  ;;  %v1234_v11 = vadd.f32 %v2893_v25, %v1233_v49 }
 0x3b3   : > { %2416 = vrcp.f32 %v1325_v4  ;;  %v1326_v12 = vadd.f32 1.0, %v2413_v8  ;;  %v1305_v13 = vmul.f32 1.442695, %v1283_v5  ;;  %v1284_v14 = vsub.f32 0.0, %v1242_v6 }
 0x3b4   : > { %2418 = vrcp.f32 %v1328_v9  ;;  %v1301_v3 = vmul.f32 1.442695, %v1281_v10  ;;  %v1282_v15 = vsub.f32 0.0, %v1234_v11 }
 0x3b5   : > { %2420 = vrcp.f32 %v1326_v12  ;;  %v1307_v16 = vmul.f32 1.442695, %v1284_v14 }
 0x3b6   : > { %2422 = vpow2.f32 %v1305_v13  ;;  %v1303_v18 = vmul.f32 1.442695, %v1282_v15 }
 0x3b7   : > { %2424 = vpow2.f32 %v1301_v3 }
 0x3b8   : > { %2426 = vpow2.f32 %v1307_v16 }
 0x3b9   : > { %2428 = vpow2.f32 %v1303_v18 }
 0x3bc   : > { %v2415_v19 = vpop.eup %2414 }
 0x3bd   : > { %v2417_v22 = vpop.eup %2416  ;;  %v1359_v23 = vsub.f32 0.0, %v2415_v19 }
 0x3be   : > { %v2419_v24 = vpop.eup %2418  ;;  %v1357_v26 = vsub.f32 0.0, %v2417_v22  ;;  %v2247_v27 = vpop.f32.mrb[40].mxu1 }
 0x3bf   : > { %v2421_v28 = vpop.eup %2420  ;;  %v1377_v29 = vmul.f32 1.442695, %v1359_v23  ;;  %v1360_v30 = vsub.f32 0.0, %v2419_v24  ;;  %v1255_v33 = vadd.f32 %v2247_v27, %v2893_v25  ;;  %v1246_v34 = vpop.f32.mrb[41].mxu1 }
 0x3c0   : > { %v2423_v37 = vpop.eup %2422  ;;  %v1373_v38 = vmul.f32 1.442695, %v1357_v26  ;;  %v1358_v39 = vsub.f32 0.0, %v2421_v28  ;;  %v1247_v40 = vadd.f32 %v2893_v25, %v1246_v34  ;;  %v2248_v41 = vpop.f32.mrb[42].mxu1 }
 0x3c1   : > { %v2425_v44 = vpop.eup %2424  ;;  %2430 = vpow2.f32 %v1377_v29  ;;  %v1379_v45 = vmul.f32 1.442695, %v1360_v30  ;;  %v1331_v46 = vadd.f32 1.0, %v2423_v37  ;;  %v1287_v47 = vsub.f32 0.0, %v1255_v33  ;;  %v1249_v48 = vpop.f32.mrb[43].mxu1 }
 0x3c2   : > { %v2427_v51 = vpop.eup %2426  ;;  %2432 = vpow2.f32 %v1373_v38  ;;  %v1375_v54 = vmul.f32 1.442695, %v1358_v39  ;;  %v1329_v55 = vadd.f32 1.0, %v2425_v44  ;;  %v1285_v56 = vsub.f32 0.0, %v1247_v40 }
 0x3c3   : > { %v2429_v57 = vpop.eup %2428  ;;  %2434 = vpow2.f32 %v1379_v45  ;;  %v1332_v58 = vadd.f32 1.0, %v2427_v51  ;;  %v1258_v61 = vadd.f32 %v2248_v41, %v2893_v25  ;;  %v1250_v1 = vadd.f32 %v2893_v25, %v1249_v48 }
 0x3c4   : > { %2436 = vpow2.f32 %v1375_v54  ;;  %v1330_v62 = vadd.f32 1.0, %v2429_v57  ;;  %v1313_v2 = vmul.f32 1.442695, %v1287_v47  ;;  %v1309_v4 = vmul.f32 1.442695, %v1285_v56 }
 0x3c5   : > { %2438 = vrcp.f32 %v1331_v46  ;;  %v1288_v17 = vsub.f32 0.0, %v1258_v61  ;;  %v1286_v5 = vsub.f32 0.0, %v1250_v1 }
 0x3c6   : > { %2440 = vrcp.f32 %v1329_v55 }
 0x3c7   : > { %2442 = vrcp.f32 %v1332_v58  ;;  %v1315_v6 = vmul.f32 1.442695, %v1288_v17  ;;  %v1311_v49 = vmul.f32 1.442695, %v1286_v5 }
 0x3c8   : > { %2444 = vrcp.f32 %v1330_v62 }
 0x3c9   : > { %2446 = vpow2.f32 %v1313_v2 }
 0x3ca   : > { %2448 = vpow2.f32 %v1309_v4 }
 0x3cb   : > { %v2431_v8 = vpop.eup %2430  ;;  %2450 = vpow2.f32 %v1315_v6 }
 0x3cc   : > { %v2433_v9 = vpop.eup %2432  ;;  %v1407_v10 = vadd.f32 1.0, %v2431_v8  ;;  %2452 = vpow2.f32 %v1311_v49 }
 0x3cd   : > { %v2435_v11 = vpop.eup %2434  ;;  %v1405_v12 = vadd.f32 1.0, %v2433_v9 }
 0x3ce   : > { %v2437_v13 = vpop.eup %2436  ;;  %2454 = vrcp.f32 %v1407_v10  ;;  %v1408_v14 = vadd.f32 1.0, %v2435_v11  ;;  %v2251_v3 = vpop.f32.mrb[44].mxu1 }
 0x3cf   : > { %v2439_v15 = vpop.eup %2438  ;;  %2456 = vrcp.f32 %v1405_v12  ;;  %v1406_v16 = vadd.f32 1.0, %v2437_v13  ;;  %v1262_v18 = vpop.f32.mrb[45].mxu1  ;;  %v1271_v23 = vadd.f32 %v2251_v3, %v2893_v25 }
 0x3d0   : > { %v2441_v19 = vpop.eup %2440  ;;  %2458 = vrcp.f32 %v1408_v14  ;;  %v1363_v22 = vsub.f32 0.0, %v2439_v15  ;;  %v2252_v24 = vpop.f32.mrb[46].mxu1  ;;  %v1263_v28 = vadd.f32 %v2893_v25, %v1262_v18 }
 0x3d1   : > { %v2443_v26 = vpop.eup %2442  ;;  %2460 = vrcp.f32 %v1406_v16  ;;  %v1361_v27 = vsub.f32 0.0, %v2441_v19  ;;  %v1265_v29 = vpop.f32.mrb[47].mxu1  ;;  %v1274_v37 = vadd.f32 %v2252_v24, %v2893_v25  ;;  %v1291_v47 = vsub.f32 0.0, %v1271_v23 }
 0x3d2   : > { %v2445_v30 = vpop.eup %2444  ;;  %v1385_v33 = vmul.f32 1.442695, %v1363_v22  ;;  %v1364_v34 = vsub.f32 0.0, %v2443_v26  ;;  %v1266_v41 = vadd.f32 %v2893_v25, %v1265_v29  ;;  %v1289_v55 = vsub.f32 0.0, %v1263_v28 }
 0x3d3   : > { %v2447_v38 = vpop.eup %2446  ;;  %v1381_v39 = vmul.f32 1.442695, %v1361_v27  ;;  %v1362_v40 = vsub.f32 0.0, %v2445_v30  ;;  %v1292_v58 = vsub.f32 0.0, %v1274_v37  ;;  %v1321_v25 = vmul.f32 1.442695, %v1291_v47 }
 0x3d4   : > { %v2449_v44 = vpop.eup %2448  ;;  %2462 = vpow2.f32 %v1385_v33  ;;  %v1387_v45 = vmul.f32 1.442695, %v1364_v34  ;;  %v1335_v46 = vadd.f32 1.0, %v2447_v38  ;;  %v1290_v62 = vsub.f32 0.0, %v1266_v41 }
 0x3d5   : > { %v2451_v48 = vpop.eup %2450  ;;  %2464 = vpow2.f32 %v1381_v39  ;;  %v1383_v51 = vmul.f32 1.442695, %v1362_v40  ;;  %v1333_v54 = vadd.f32 1.0, %v2449_v44  ;;  %v1317_v17 = vmul.f32 1.442695, %v1289_v55 }
 0x3d6   : > { %v2453_v56 = vpop.eup %2452  ;;  %2466 = vpow2.f32 %v1387_v45  ;;  %v1336_v57 = vadd.f32 1.0, %v2451_v48  ;;  %v1323_v5 = vmul.f32 1.442695, %v1292_v58  ;;  %v1319_v49 = vmul.f32 1.442695, %v1290_v62 }
 0x3d7   : > { %2468 = vpow2.f32 %v1383_v51  ;;  %v1334_v61 = vadd.f32 1.0, %v2453_v56 }
 0x3d8   : > { %v2455_v1 = vpop.eup %2454  ;;  %2470 = vrcp.f32 %v1335_v46 }
 0x3d9   : > { %v2457_v2 = vpop.eup %2456  ;;  %2472 = vrcp.f32 %v1333_v54  ;;  %v1439_v8 = vmul.f32 %v2455_v1, %v2797_v42 }
 0x3da   : > { %v2459_v4 = vpop.eup %2458  ;;  %2474 = vrcp.f32 %v1336_v57  ;;  %v1437_v10 = vmul.f32 %v2457_v2, %v2789_v31 }
 0x3db   : > { %v2461_v6 = vpop.eup %2460  ;;  %2476 = vrcp.f32 %v1334_v61  ;;  %v1440_v9 = vmul.f32 %v2459_v4, %v2799_v43 }
 0x3dc   : > { %2478 = vpow2.f32 %v1321_v25  ;;  %v1438_v11 = vmul.f32 %v2461_v6, %v2791_v32 }
 0x3dd   : > { %2480 = vpow2.f32 %v1317_v17  ;;  %v1454_v12 = vpack.c.bf16 %v1440_v9, %v1439_v8 }
 0x3de   : > { %v2463_v13 = vpop.eup %2462  ;;  %2482 = vpow2.f32 %v1323_v5  ;;  %v1453_v14 = vpack.c.bf16 %v1438_v11, %v1437_v10 }
 0x3df   : > { %v2465_v3 = vpop.eup %2464  ;;  %v1411_v15 = vadd.f32 1.0, %v2463_v13  ;;  %2484 = vpow2.f32 %v1319_v49 }
 0x3e0   : > { %v2467_v16 = vpop.eup %2466  ;;  %v1409_v18 = vadd.f32 1.0, %v2465_v3  ;;  %2269 = vmatprep.mubr.bf16.mxu0 %v1453_v14 }
 0x3e1   : > { %v2469_v19 = vpop.eup %2468  ;;  %2486 = vrcp.f32 %v1411_v15  ;;  %v1412_v42 = vadd.f32 1.0, %v2467_v16  ;;  %2270 = vmatmul.mubr.bf16.vlgmr.msra.gmra.mrb[48].mxu0 %v1454_v12 }
 0x3e2   : > { %v2471_v43 = vpop.eup %2470  ;;  %2488 = vrcp.f32 %v1409_v18  ;;  %v1410_v31 = vadd.f32 1.0, %v2469_v19 }
 0x3e3   : > { %v2473_v22 = vpop.eup %2472  ;;  %2490 = vrcp.f32 %v1412_v42  ;;  %v1367_v32 = vsub.f32 0.0, %v2471_v43 }
 0x3e4   : > { %v2475_v23 = vpop.eup %2474  ;;  %2492 = vrcp.f32 %v1410_v31  ;;  %v1365_v24 = vsub.f32 0.0, %v2473_v22 }
 0x3e5   : > { %v2477_v26 = vpop.eup %2476  ;;  %v1393_v27 = vmul.f32 1.442695, %v1367_v32  ;;  %v1368_v28 = vsub.f32 0.0, %v2475_v23 }
 0x3e6   : > { %v2479_v29 = vpop.eup %2478  ;;  %v1389_v30 = vmul.f32 1.442695, %v1365_v24  ;;  %v1366_v33 = vsub.f32 0.0, %v2477_v26 }
 0x3e7   : > { %v2481_v34 = vpop.eup %2480  ;;  %2494 = vpow2.f32 %v1393_v27  ;;  %v1395_v37 = vmul.f32 1.442695, %v1368_v28  ;;  %v1339_v38 = vadd.f32 1.0, %v2479_v29 }
 0x3e8   : > { %v2483_v39 = vpop.eup %2482  ;;  %2496 = vpow2.f32 %v1389_v30  ;;  %v1391_v40 = vmul.f32 1.442695, %v1366_v33  ;;  %v1337_v41 = vadd.f32 1.0, %v2481_v34 }
 0x3e9   : > { %v2485_v44 = vpop.eup %2484  ;;  %2498 = vpow2.f32 %v1395_v37  ;;  %v1340_v45 = vadd.f32 1.0, %v2483_v39 }
 0x3ea   : > { %2500 = vpow2.f32 %v1391_v40  ;;  %v1338_v46 = vadd.f32 1.0, %v2485_v44 }
 0x3eb   : > { %v2487_v47 = vpop.eup %2486  ;;  %2502 = vrcp.f32 %v1339_v38 }
 0x3ec   : > { %v2489_v48 = vpop.eup %2488  ;;  %2504 = vrcp.f32 %v1337_v41  ;;  %v1443_v55 = vmul.f32 %v2487_v47, %v2813_v50 }
 0x3ed   : > { %v2491_v51 = vpop.eup %2490  ;;  %2506 = vrcp.f32 %v1340_v45  ;;  %v1441_v57 = vmul.f32 %v2489_v48, %v2805_v59  ;;  %v2403_v45 = vld [vmem:[%s2997_s3 + $0xe8] sm:$0xff]  }
 0x3ee   : > { %v2493_v54 = vpop.eup %2492  ;;  %2508 = vrcp.f32 %v1338_v46  ;;  %v1444_v56 = vmul.f32 %v2491_v51, %v2815_v7  ;;  %2295 = vmatprep.subr.bf16.mxu1 %v2403_v45 }
 0x3ef   : > { %v1442_v58 = vmul.f32 %v2493_v54, %v2807_v60  ;;  %2296 = vmatpush3.bf16.msra.mxu1 %v2403_v45 }
 0x3f0   : > { %v1456_v61 = vpack.c.bf16 %v1444_v56, %v1443_v55 }
 0x3f1   : > { %v2495_v62 = vpop.eup %2494  ;;  %v1455_v1 = vpack.c.bf16 %v1442_v58, %v1441_v57 }
 0x3f2   : > { %v2497_v25 = vpop.eup %2496  ;;  %v1415_v2 = vadd.f32 1.0, %v2495_v62 }
 0x3f3   : > { %v2499_v17 = vpop.eup %2498  ;;  %v1413_v4 = vadd.f32 1.0, %v2497_v25  ;;  %2273 = vmatprep.mubr.bf16.mxu0 %v1455_v1 }
 0x3f4   : > { %v2501_v5 = vpop.eup %2500  ;;  %2510 = vrcp.f32 %v1415_v2  ;;  %v1416_v6 = vadd.f32 1.0, %v2499_v17  ;;  %2274 = vmatmul.mubr.bf16.gmra.mrb[52].mxu0 %v1456_v61 }
 0x3f5   : > { %v2503_v49 = vpop.eup %2502  ;;  %2512 = vrcp.f32 %v1413_v4  ;;  %v1414_v50 = vadd.f32 1.0, %v2501_v5 }
 0x3f6   : > { %v2505_v7 = vpop.eup %2504  ;;  %2514 = vrcp.f32 %v1416_v6  ;;  %v1371_v59 = vsub.f32 0.0, %v2503_v49 }
 0x3f7   : > { %v2507_v8 = vpop.eup %2506  ;;  %2516 = vrcp.f32 %v1414_v50  ;;  %v1369_v60 = vsub.f32 0.0, %v2505_v7 }
 0x3f8   : > { %v2509_v9 = vpop.eup %2508  ;;  %v1401_v10 = vmul.f32 1.442695, %v1371_v59  ;;  %v1372_v11 = vsub.f32 0.0, %v2507_v8 }
 0x3f9   : > { %v1397_v12 = vmul.f32 1.442695, %v1369_v60  ;;  %v1370_v13 = vsub.f32 0.0, %v2509_v9 }
 0x3fa   : > { %2518 = vpow2.f32 %v1401_v10  ;;  %v1403_v14 = vmul.f32 1.442695, %v1372_v11 }
 0x3fb   : > { %2520 = vpow2.f32 %v1397_v12  ;;  %v1399_v3 = vmul.f32 1.442695, %v1370_v13 }
 0x3fc   : > { %2522 = vpow2.f32 %v1403_v14 }
 0x3fd   : > { %2524 = vpow2.f32 %v1399_v3 }
 0x3fe   : > { %v2511_v15 = vpop.eup %2510 }
 0x3ff   : > { %v2513_v16 = vpop.eup %2512  ;;  %v1447_v42 = vmul.f32 %v2511_v15, %v2829_v35 }
 0x400   : > { %v2515_v18 = vpop.eup %2514  ;;  %v1445_v31 = vmul.f32 %v2513_v16, %v2821_v20 }
 0x401   : > { %v2517_v19 = vpop.eup %2516  ;;  %v1448_v43 = vmul.f32 %v2515_v18, %v2831_v36 }
 0x402   : > { %v1446_v22 = vmul.f32 %v2517_v19, %v2823_v21 }
 0x403   : > { %v1458_v32 = vpack.c.bf16 %v1448_v43, %v1447_v42 }
 0x404   : > { %v2519_v23 = vpop.eup %2518  ;;  %v1457_v24 = vpack.c.bf16 %v1446_v22, %v1445_v31 }
 0x405   : > { %v2521_v26 = vpop.eup %2520  ;;  %v1419_v27 = vadd.f32 1.0, %v2519_v23 }
 0x406   : > { %v2523_v28 = vpop.eup %2522  ;;  %v1417_v29 = vadd.f32 1.0, %v2521_v26  ;;  %2277 = vmatprep.mubr.bf16.mxu0 %v1457_v24 }
 0x407   : > { %v2525_v30 = vpop.eup %2524  ;;  %2526 = vrcp.f32 %v1419_v27  ;;  %v1420_v33 = vadd.f32 1.0, %v2523_v28  ;;  %2278 = vmatmul.mubr.bf16.gmra.mrb[56].mxu0 %v1458_v32 }
 0x408   : > { %2528 = vrcp.f32 %v1417_v29  ;;  %v1418_v35 = vadd.f32 1.0, %v2525_v30 }
 0x409   : > { %2530 = vrcp.f32 %v1420_v33 }
 0x40a   : > { %2532 = vrcp.f32 %v1418_v35 }
 0x411   : > { %v2527_v36 = vpop.eup %2526 }
 0x412   : > { %v2529_v20 = vpop.eup %2528  ;;  %v1451_v37 = vmul.f32 %v2527_v36, %v2845_v63  ;;  %v2404_v63 = vld [vmem:[%s2997_s3 + $0xf0] sm:$0xff]  }
 0x413   : > { %v2531_v34 = vpop.eup %2530  ;;  %v1449_v39 = vmul.f32 %v2529_v20, %v2837_v52  ;;  %v2405_v52 = vld [vmem:[%s2997_s3 + $0xf8] sm:$0xff]   ;;  %2297 = vmatprep.subr.bf16.mxu1 %v2404_v63 }
 0x414   : > { %v2533_v21 = vpop.eup %2532  ;;  %v1452_v38 = vmul.f32 %v2531_v34, %v2847_v0  ;;  %2298 = vmatpush3.bf16.msra.mxu1 %v2404_v63 }
 0x415   : > { %v1450_v40 = vmul.f32 %v2533_v21, %v2839_v53  ;;  %2299 = vmatprep.subr.bf16.mxu1 %v2405_v52  ;;  %v2948_v53 = vld [vmem:[%s2998_s4 + $0x5] ss:$0 sm:$0xff] }
 0x416   : > { %v1460_v41 = vpack.c.bf16 %v1452_v38, %v1451_v37 }
 0x417   : > { %v1459_v44 = vpack.c.bf16 %v1450_v40, %v1449_v39 }
 0x418   : > { %2300 = vmatpush3.bf16.msra.mxu1 %v2405_v52 }
 0x419   : > { %2281 = vmatprep.mubr.bf16.mxu0 %v1459_v44 }
 0x41a   : > { %2282 = vmatmul.mubr.bf16.gmra.mrb[60].mxu0 %v1460_v41 }
 0x4b4   : > { %v2271_v0 = vpop.f32.mrb[48].mxu0 }
 0x4b5   : > { %v1575_v46 = vadd.f32 %v2271_v0, %v2948_v53  ;;  %v1566_v47 = vpop.f32.mrb[49].mxu0 }
 0x4b6   : > { %v1567_v48 = vadd.f32 %v2948_v53, %v1566_v47  ;;  %v2272_v51 = vpop.f32.mrb[50].mxu0 }
 0x4b7   : > { %v1647_v54 = vmul.f32 0.2, %v1575_v46  ;;  %v1578_v55 = vadd.f32 %v2272_v51, %v2948_v53  ;;  %v1569_v56 = vpop.f32.mrb[51].mxu0  ;;  %vm1631_vm0 = vcmp.ge.f32.partialorder %v1575_v46, 0.0 }
 0x4b8   : > { %v1645_v57 = vmul.f32 0.2, %v1567_v48  ;;  %v1570_v58 = vadd.f32 %v2948_v53, %v1569_v56  ;;  %vm1629_vm1 = vcmp.ge.f32.partialorder %v1567_v48, 0.0 }
 0x4b9   : > { %vm1632_vm2 = vcmp.ge.f32.partialorder %v1578_v55, 0.0  ;;  %v1648_v61 = vmul.f32 0.2, %v1578_v55  ;;  %v1663_v1 = vsel %vm1631_vm0, %v1575_v46, %v1647_v54 }
 0x4ba   : > { %vm1630_vm3 = vcmp.ge.f32.partialorder %v1570_v58, 0.0  ;;  %v1646_v62 = vmul.f32 0.2, %v1570_v58  ;;  %v1661_v17 = vsel %vm1629_vm1, %v1567_v48, %v1645_v57 }
 0x4bb   : > { %v1664_v25 = vsel %vm1632_vm2, %v1578_v55, %v1648_v61 }
 0x4bc   : > { %v1678_v2 = vpack.c.bf16 %v1664_v25, %v1663_v1  ;;  %v1662_v4 = vsel %vm1630_vm3, %v1570_v58, %v1646_v62  ;;  %v2050_v58 = vld [vmem:[%s2998_s4 + $0x6] ss:$0 sm:$0xff] }
 0x4bd   : > { %v1677_v5 = vpack.c.bf16 %v1662_v4, %v1661_v17 }
 0x4bf   : > { %2301 = vmatprep.mubr.bf16.mxu1 %v1677_v5 }
 0x4c0   : > { %2302 = vmatmul.mubr.bf16.vlgmr.msra.gmra.mrb[48].mxu1 %v1678_v2 }
 0x4c7   : > { %v2275_v6 = vpop.f32.mrb[52].mxu0 }
 0x4c8   : > { %v1591_v49 = vadd.f32 %v2275_v6, %v2948_v53  ;;  %v1582_v50 = vpop.f32.mrb[53].mxu0 }
 0x4c9   : > { %v1583_v7 = vadd.f32 %v2948_v53, %v1582_v50  ;;  %v2276_v59 = vpop.f32.mrb[54].mxu0 }
 0x4ca   : > { %v1651_v8 = vmul.f32 0.2, %v1591_v49  ;;  %v1594_v60 = vadd.f32 %v2276_v59, %v2948_v53  ;;  %v1585_v9 = vpop.f32.mrb[55].mxu0  ;;  %vm1635_vm4 = vcmp.ge.f32.partialorder %v1591_v49, 0.0 }
 0x4cb   : > { %v1649_v10 = vmul.f32 0.2, %v1583_v7  ;;  %v1586_v11 = vadd.f32 %v2948_v53, %v1585_v9  ;;  %vm1633_vm5 = vcmp.ge.f32.partialorder %v1583_v7, 0.0 }
 0x4cc   : > { %vm1636_vm6 = vcmp.ge.f32.partialorder %v1594_v60, 0.0  ;;  %v1652_v12 = vmul.f32 0.2, %v1594_v60  ;;  %v1667_v14 = vsel %vm1635_vm4, %v1591_v49, %v1651_v8 }
 0x4cd   : > { %vm1634_vm7 = vcmp.ge.f32.partialorder %v1586_v11, 0.0  ;;  %v1650_v13 = vmul.f32 0.2, %v1586_v11  ;;  %v1665_v15 = vsel %vm1633_vm5, %v1583_v7, %v1649_v10 }
 0x4ce   : > { %v1668_v3 = vsel %vm1636_vm6, %v1594_v60, %v1652_v12 }
 0x4cf   : > { %v1666_v16 = vsel %vm1634_vm7, %v1586_v11, %v1650_v13  ;;  %v1680_v18 = vpack.c.bf16 %v1668_v3, %v1667_v14 }
 0x4d0   : > { %v1679_v19 = vpack.c.bf16 %v1666_v16, %v1665_v15 }
 0x4d2   : > { %2305 = vmatprep.mubr.bf16.mxu1 %v1679_v19 }
 0x4d3   : > { %2306 = vmatmul.mubr.bf16.gmra.mrb[52].mxu1 %v1680_v18 }
 0x4da   : > { %v2279_v42 = vpop.f32.mrb[56].mxu0 }
 0x4db   : > { %v1607_v43 = vadd.f32 %v2279_v42, %v2948_v53  ;;  %v1598_v31 = vpop.f32.mrb[57].mxu0 }
 0x4dc   : > { %v1599_v22 = vadd.f32 %v2948_v53, %v1598_v31  ;;  %v2280_v32 = vpop.f32.mrb[58].mxu0 }
 0x4dd   : > { %v1655_v23 = vmul.f32 0.2, %v1607_v43  ;;  %v1610_v24 = vadd.f32 %v2280_v32, %v2948_v53  ;;  %v1601_v26 = vpop.f32.mrb[59].mxu0  ;;  %vm1639_vm8 = vcmp.ge.f32.partialorder %v1607_v43, 0.0 }
 0x4de   : > { %v1653_v27 = vmul.f32 0.2, %v1599_v22  ;;  %v1602_v28 = vadd.f32 %v2948_v53, %v1601_v26  ;;  %vm1637_vm9 = vcmp.ge.f32.partialorder %v1599_v22, 0.0 }
 0x4df   : > { %vm1640_vm10 = vcmp.ge.f32.partialorder %v1610_v24, 0.0  ;;  %v1656_v29 = vmul.f32 0.2, %v1610_v24  ;;  %v1671_v33 = vsel %vm1639_vm8, %v1607_v43, %v1655_v23 }
 0x4e0   : > { %vm1638_vm11 = vcmp.ge.f32.partialorder %v1602_v28, 0.0  ;;  %v1654_v30 = vmul.f32 0.2, %v1602_v28  ;;  %v1669_v36 = vsel %vm1637_vm9, %v1599_v22, %v1653_v27 }
 0x4e1   : > { %v1672_v35 = vsel %vm1640_vm10, %v1610_v24, %v1656_v29 }
 0x4e2   : > { %v1670_v20 = vsel %vm1638_vm11, %v1602_v28, %v1654_v30  ;;  %v1682_v34 = vpack.c.bf16 %v1672_v35, %v1671_v33 }
 0x4e3   : > { %v1681_v21 = vpack.c.bf16 %v1670_v20, %v1669_v36 }
 0x4e5   : > { %2309 = vmatprep.mubr.bf16.mxu1 %v1681_v21 }
 0x4e6   : > { %2310 = vmatmul.mubr.bf16.gmra.mrb[56].mxu1 %v1682_v34 }
 0x4ed   : > { %v2283_v37 = vpop.f32.mrb[60].mxu0 }
 0x4ee   : > { %v1623_v38 = vadd.f32 %v2283_v37, %v2948_v53  ;;  %v1614_v39 = vpop.f32.mrb[61].mxu0 }
 0x4ef   : > { %v1615_v40 = vadd.f32 %v2948_v53, %v1614_v39  ;;  %v2284_v41 = vpop.f32.mrb[62].mxu0 }
 0x4f0   : > { %v1659_v44 = vmul.f32 0.2, %v1623_v38  ;;  %v1626_v45 = vadd.f32 %v2284_v41, %v2948_v53  ;;  %v1617_v63 = vpop.f32.mrb[63].mxu0  ;;  %vm1643_vm12 = vcmp.ge.f32.partialorder %v1623_v38, 0.0 }
 0x4f1   : > { %v1657_v52 = vmul.f32 0.2, %v1615_v40  ;;  %v1618_v0 = vadd.f32 %v2948_v53, %v1617_v63  ;;  %vm1641_vm13 = vcmp.ge.f32.partialorder %v1615_v40, 0.0 }
 0x4f2   : > { %vm1644_vm14 = vcmp.ge.f32.partialorder %v1626_v45, 0.0  ;;  %v1660_v46 = vmul.f32 0.2, %v1626_v45  ;;  %v1675_v48 = vsel %vm1643_vm12, %v1623_v38, %v1659_v44 }
 0x4f3   : > { %vm1642_vm15 = vcmp.ge.f32.partialorder %v1618_v0, 0.0  ;;  %v1658_v47 = vmul.f32 0.2, %v1618_v0  ;;  %v1673_v54 = vsel %vm1641_vm13, %v1615_v40, %v1657_v52 }
 0x4f4   : > { %v1676_v51 = vsel %vm1644_vm14, %v1626_v45, %v1660_v46 }
 0x4f5   : > { %v1674_v55 = vsel %vm1642_vm15, %v1618_v0, %v1658_v47  ;;  %v1684_v56 = vpack.c.bf16 %v1676_v51, %v1675_v48 }
 0x4f6   : > { %v1683_v57 = vpack.c.bf16 %v1674_v55, %v1673_v54 }
 0x4f8   : > { %2313 = vmatprep.mubr.bf16.mxu1 %v1683_v57 }
 0x4f9   : > { %2314 = vmatmul.mubr.bf16.gmra.mrb[60].mxu1 %v1684_v56 }
 0x593   : > { %v2303_v53 = vpop.f32.mrb[48].mxu1 }
 0x594   : > { %v1799_v61 = vadd.f32 %v2303_v53, %v2050_v58  ;;  %v1790_v62 = vpop.f32.mrb[49].mxu1 }
 0x595   : > { %v1791_v1 = vadd.f32 %v2050_v58, %v1790_v62  ;;  %v2304_v25 = vpop.f32.mrb[50].mxu1 }
 0x596   : > { %1855 = vst [vmem:[%s2973_s6 + $0x10] sm:$0xff] %v1799_v61  ;;  %v1802_v2 = vadd.f32 %v2304_v25, %v2050_v58  ;;  %v1793_v17 = vpop.f32.mrb[51].mxu1 }
 0x597   : > { %1853 = vst [vmem:[%s2973_s6] sm:$0xff] %v1791_v1  ;;  %v1794_v4 = vadd.f32 %v2050_v58, %v1793_v17 }
 0x598   : > { %1856 = vst [vmem:[%s2973_s6 + $0x18] sm:$0xff] %v1802_v2 }
 0x599   : > { %1854 = vst [vmem:[%s2973_s6 + $0x8] sm:$0xff] %v1794_v4 }
 0x5a6   : > { %v2307_v5 = vpop.f32.mrb[52].mxu1 }
 0x5a7   : > { %v1815_v6 = vadd.f32 %v2307_v5, %v2050_v58  ;;  %v1806_v49 = vpop.f32.mrb[53].mxu1 }
 0x5a8   : > { %v1807_v50 = vadd.f32 %v2050_v58, %v1806_v49  ;;  %v2308_v7 = vpop.f32.mrb[54].mxu1 }
 0x5a9   : > { %1859 = vst [vmem:[%s2973_s6 + $0x30] sm:$0xff] %v1815_v6  ;;  %v1818_v59 = vadd.f32 %v2308_v7, %v2050_v58  ;;  %v1809_v8 = vpop.f32.mrb[55].mxu1 }
 0x5aa   : > { %1857 = vst [vmem:[%s2973_s6 + $0x20] sm:$0xff] %v1807_v50  ;;  %v1810_v60 = vadd.f32 %v2050_v58, %v1809_v8 }
 0x5ab   : > { %1860 = vst [vmem:[%s2973_s6 + $0x38] sm:$0xff] %v1818_v59 }
 0x5ac   : > { %1858 = vst [vmem:[%s2973_s6 + $0x28] sm:$0xff] %v1810_v60 }
 0x5b9   : > { %v2311_v9 = vpop.f32.mrb[56].mxu1 }
 0x5ba   : > { %v1831_v10 = vadd.f32 %v2311_v9, %v2050_v58  ;;  %v1822_v11 = vpop.f32.mrb[57].mxu1 }
 0x5bb   : > { %v1823_v12 = vadd.f32 %v2050_v58, %v1822_v11  ;;  %v2312_v13 = vpop.f32.mrb[58].mxu1 }
 0x5bc   : > { %1863 = vst [vmem:[%s2973_s6 + $0x50] sm:$0xff] %v1831_v10  ;;  %v1834_v14 = vadd.f32 %v2312_v13, %v2050_v58  ;;  %v1825_v3 = vpop.f32.mrb[59].mxu1 }
 0x5bd   : > { %1861 = vst [vmem:[%s2973_s6 + $0x40] sm:$0xff] %v1823_v12  ;;  %v1826_v15 = vadd.f32 %v2050_v58, %v1825_v3 }
 0x5be   : > { %1864 = vst [vmem:[%s2973_s6 + $0x58] sm:$0xff] %v1834_v14 }
 0x5bf   : > { %1862 = vst [vmem:[%s2973_s6 + $0x48] sm:$0xff] %v1826_v15 }
 0x5cc   : > { %v2315_v16 = vpop.f32.mrb[60].mxu1 }
 0x5cd   : > { %v1847_v18 = vadd.f32 %v2315_v16, %v2050_v58  ;;  %v1838_v19 = vpop.f32.mrb[61].mxu1 }
 0x5ce   : > { %v1839_v42 = vadd.f32 %v2050_v58, %v1838_v19  ;;  %v2316_v43 = vpop.f32.mrb[62].mxu1 }
 0x5cf   : > { %1867 = vst [vmem:[%s2973_s6 + $0x70] sm:$0xff] %v1847_v18  ;;  %v1850_v31 = vadd.f32 %v2316_v43, %v2050_v58  ;;  %v1841_v22 = vpop.f32.mrb[63].mxu1 }
 0x5d0   : > { %1865 = vst [vmem:[%s2973_s6 + $0x60] sm:$0xff] %v1839_v42  ;;  %v1842_v32 = vadd.f32 %v2050_v58, %v1841_v22 }
 0x5d1   : > { %1868 = vst [vmem:[%s2973_s6 + $0x78] sm:$0xff] %v1850_v31 }
 0x5d2   : > { %1866 = vst [vmem:[%s2973_s6 + $0x68] sm:$0xff] %v1842_v32 }
 0x5d3 PF: > { %s15_s18 = sadd.s32 1, %s2540_s18  }
 0x5d4   : > { %p12_p4 = scmp.ge.s32.totalorder %s15_s18, 4  }
 0x5d6   :  { %14 = sbr.rel (!%p12_p4) target bundleno = 1 (0x1), region = 73 }

</bundles_post_ra>
